<compile_context>
chip_gen: v6e
topology: v6e:2x2x1
jax: 0.10.0
libtpu: 0.0.40
codegen_flags: <defaults>
</compile_context>

<pallas_src>
import functools

import jax
import jax.numpy as jnp
from jax.experimental import pallas as pl
from jax.experimental.pallas import tpu as pltpu


def head_kernel(x_ref, wq_ref, wk_ref, wv_ref, o_ref, *, scale):
    # x_ref : (1, T, C)  bf16   one batch element
    # w*_ref: (C, hs)    bf16   VMEM-resident projection weights
    # o_ref : (1, T, hs) f32
    x = x_ref[0]                                                      # (T, C)

    # Projections with f32 accumulation on the MXU.
    q = jnp.dot(x, wq_ref[...], preferred_element_type=jnp.float32)   # (T, hs)
    k = jnp.dot(x, wk_ref[...], preferred_element_type=jnp.float32)   # (T, hs)
    v = jnp.dot(x, wv_ref[...], preferred_element_type=jnp.float32)   # (T, hs)

    # Scores: q @ k^T * head_size**-0.5 (bf16 MXU inputs, f32 accumulation).
    s = jnp.dot(q.astype(jnp.bfloat16), k.astype(jnp.bfloat16).T,
                preferred_element_type=jnp.float32) * scale           # (T, T) f32

    # Causal mask (tril): key index must not exceed query index.
    T = s.shape[0]
    row = jax.lax.broadcasted_iota(jnp.int32, (T, T), 0)
    col = jax.lax.broadcasted_iota(jnp.int32, (T, T), 1)
    s = jnp.where(col <= row, s, -jnp.inf)

    # Softmax in f32 (exp on the EUP, reductions on the XLU).
    m = jnp.max(s, axis=-1, keepdims=True)
    p = jnp.exp(s - m)
    l = jnp.sum(p, axis=-1, keepdims=True)
    p = p * pl.reciprocal(l, approx=True)

    out = jnp.dot(p.astype(jnp.bfloat16), v.astype(jnp.bfloat16),
                  preferred_element_type=jnp.float32)                  # (T, hs) f32
    o_ref[0] = out.astype(o_ref.dtype)


@jax.jit
def head_attention(x, wq, wk, wv):
    """x: (B, T, C) f32; wq/wk/wv: (C, head_size) f32 -> (B, T, head_size) f32."""
    B, T, C = x.shape
    hs = wq.shape[1]
    assert T % 8 == 0, "sequence length must be a multiple of 8"

    # bf16 MXU inputs (halves HBM DMA bytes); accumulation stays f32 in-kernel.
    x_bf = x.astype(jnp.bfloat16)
    wq_bf = wq.astype(jnp.bfloat16)
    wk_bf = wk.astype(jnp.bfloat16)
    wv_bf = wv.astype(jnp.bfloat16)

    scale = 1.0 / float(hs) ** 0.5
    kernel = functools.partial(head_kernel, scale=scale)

    flops = B * (3 * 2 * T * C * hs + 2 * 2 * T * T * hs)
    bytes_accessed = (x_bf.size + wq_bf.size + wk_bf.size + wv_bf.size) * 2 \
        + B * T * hs * 4
    cost = pl.CostEstimate(flops=flops, transcendentals=B * T * T,
                           bytes_accessed=bytes_accessed)

    out = pl.pallas_call(
        kernel,
        out_shape=jax.ShapeDtypeStruct((B, T, hs), jnp.float32),
        grid_spec=pltpu.PrefetchScalarGridSpec(
            num_scalar_prefetch=0,
            grid=(B,),
            in_specs=[
                pl.BlockSpec((1, T, C), lambda b: (b, 0, 0)),   # x (one batch)
                pl.BlockSpec((C, hs), lambda b: (0, 0)),        # wq (resident)
                pl.BlockSpec((C, hs), lambda b: (0, 0)),        # wk (resident)
                pl.BlockSpec((C, hs), lambda b: (0, 0)),        # wv (resident)
            ],
            out_specs=pl.BlockSpec((1, T, hs), lambda b: (b, 0, 0)),
        ),
        compiler_params=pltpu.CompilerParams(
            dimension_semantics=("parallel",),
            vmem_limit_bytes=64 * 1024 * 1024,
        ),
        cost_estimate=cost,
    )(x_bf, wq_bf, wk_bf, wv_bf)
    return out


def head_ref(x, wq, wk, wv):
    """Pure-JAX f32 reference matching the PyTorch module (eval mode)."""
    _, T, _ = x.shape
    hs = wq.shape[1]
    q = jnp.einsum("btc,ch->bth", x, wq)
    k = jnp.einsum("btc,ch->bth", x, wk)
    v = jnp.einsum("btc,ch->bth", x, wv)
    wei = jnp.einsum("bqh,bkh->bqk", q, k) * (hs ** -0.5)
    mask = jnp.tril(jnp.ones((T, T), dtype=bool))
    wei = jnp.where(mask[None], wei, -jnp.inf)
    wei = jax.nn.softmax(wei, axis=-1)
    return jnp.einsum("bqk,bkh->bqh", wei, v)


if __name__ == "__main__":
    # Module constants: block_size = 256 (T <= 256), n_embd = 400.
    n_embd = 400
    head_size = 64
    B, T = 2, 128

    key = jax.random.PRNGKey(0)
    kx, kq, kk, kv = jax.random.split(key, 4)

    x = jax.random.normal(kx, (B, T, n_embd), dtype=jnp.float32)
    # nn.Linear default init: uniform(-1/sqrt(fan_in), +1/sqrt(fan_in)); stored as (in, out).
    lim = 1.0 / (n_embd ** 0.5)
    wq = jax.random.uniform(kq, (n_embd, head_size), jnp.float32, -lim, lim)
    wk = jax.random.uniform(kk, (n_embd, head_size), jnp.float32, -lim, lim)
    wv = jax.random.uniform(kv, (n_embd, head_size), jnp.float32, -lim, lim)

    out = head_attention(x, wq, wk, wv)
    out = jax.block_until_ready(out)

    ref = head_ref(x, wq, wk, wv)
    assert out.shape == (B, T, head_size)
    # bf16 MXU inputs => ~1e-2-level deviation from the f32 reference is expected.
    assert jnp.allclose(out, ref, atol=3e-2, rtol=3e-2), \
        float(jnp.max(jnp.abs(out - ref)))

    print("KERNEL_OK")
</pallas_src>

<mosaic_0001>
module attributes {stable_mosaic.version = 11 : i64} {
  func.func @head_kernel(%arg0: i32, %arg1: memref<1x128x400xbf16, #tpu.memory_space<vmem>>, %arg2: memref<400x64xbf16, #tpu.memory_space<vmem>>, %arg3: memref<400x64xbf16, #tpu.memory_space<vmem>>, %arg4: memref<400x64xbf16, #tpu.memory_space<vmem>>, %arg5: memref<1x128x64xf32, #tpu.memory_space<vmem>>) attributes {dimension_semantics = [#tpu.dimension_semantics<parallel>], iteration_bounds = array<i64: 2>, scalar_prefetch = 0 : i64, scratch_operands = 0 : i64, tpu.core_type = #tpu.core_type<tc>, window_params = [{transform_indices = @transform_0, window_bounds = array<i64: 1, 128, 400>}, {pipeline_mode = #tpu.pipeline_mode<synchronous>, transform_indices = @transform_1, window_bounds = array<i64: 400, 64>}, {pipeline_mode = #tpu.pipeline_mode<synchronous>, transform_indices = @transform_2, window_bounds = array<i64: 400, 64>}, {pipeline_mode = #tpu.pipeline_mode<synchronous>, transform_indices = @transform_3, window_bounds = array<i64: 400, 64>}, {transform_indices = @transform_4, window_bounds = array<i64: 1, 128, 64>}]} {
    %c0 = arith.constant 0 : index
    %c0_0 = arith.constant 0 : index
    %c0_1 = arith.constant 0 : index
    %0 = vector.load %arg1[%c0, %c0_0, %c0_1] : memref<1x128x400xbf16, #tpu.memory_space<vmem>>, vector<1x128x400xbf16>
    %1 = vector.shape_cast %0 : vector<1x128x400xbf16> to vector<128x400xbf16>
    %c0_2 = arith.constant 0 : index
    %c0_3 = arith.constant 0 : index
    %2 = vector.load %arg2[%c0_2, %c0_3] : memref<400x64xbf16, #tpu.memory_space<vmem>>, vector<400x64xbf16>
    %cst = arith.constant dense<0.000000e+00> : vector<128x64xf32>
    %3 = tpu.matmul %1, %2, %cst {dimension_numbers = #tpu.dot_dimension_numbers<[1], [0], [0], [1], [0, 0, 1, 1], [], []>} : vector<128x400xbf16>, vector<400x64xbf16>, vector<128x64xf32> -> vector<128x64xf32>
    %c0_4 = arith.constant 0 : index
    %c0_5 = arith.constant 0 : index
    %4 = vector.load %arg3[%c0_4, %c0_5] : memref<400x64xbf16, #tpu.memory_space<vmem>>, vector<400x64xbf16>
    %cst_6 = arith.constant dense<0.000000e+00> : vector<128x64xf32>
    %5 = tpu.matmul %1, %4, %cst_6 {dimension_numbers = #tpu.dot_dimension_numbers<[1], [0], [0], [1], [0, 0, 1, 1], [], []>} : vector<128x400xbf16>, vector<400x64xbf16>, vector<128x64xf32> -> vector<128x64xf32>
    %c0_7 = arith.constant 0 : index
    %c0_8 = arith.constant 0 : index
    %6 = vector.load %arg4[%c0_7, %c0_8] : memref<400x64xbf16, #tpu.memory_space<vmem>>, vector<400x64xbf16>
    %cst_9 = arith.constant dense<0.000000e+00> : vector<128x64xf32>
    %7 = tpu.matmul %1, %6, %cst_9 {dimension_numbers = #tpu.dot_dimension_numbers<[1], [0], [0], [1], [0, 0, 1, 1], [], []>} : vector<128x400xbf16>, vector<400x64xbf16>, vector<128x64xf32> -> vector<128x64xf32>
    %8 = arith.truncf %3 : vector<128x64xf32> to vector<128x64xbf16>
    %9 = arith.truncf %5 : vector<128x64xf32> to vector<128x64xbf16>
    %10 = tpu.transpose %9, [1, 0] : vector<128x64xbf16> -> vector<64x128xbf16>
    %cst_10 = arith.constant dense<0.000000e+00> : vector<128x128xf32>
    %11 = tpu.matmul %8, %10, %cst_10 {dimension_numbers = #tpu.dot_dimension_numbers<[1], [0], [0], [1], [0, 0, 1, 1], [], []>} : vector<128x64xbf16>, vector<64x128xbf16>, vector<128x128xf32> -> vector<128x128xf32>
    %cst_11 = arith.constant 1.250000e-01 : f32
    %12 = vector.broadcast %cst_11 : f32 to vector<128x128xf32>
    %13 = arith.mulf %11, %12 : vector<128x128xf32>
    %14 = tpu.iota {dimensions = array<i32: 0>} : vector<128x128xi32>
    %15 = tpu.iota {dimensions = array<i32: 1>} : vector<128x128xi32>
    %16 = arith.cmpi sle, %15, %14 : vector<128x128xi32>
    %cst_12 = arith.constant 0xFF800000 : f32
    %17 = vector.broadcast %cst_12 : f32 to vector<128x128xf32>
    %18 = arith.select %16, %13, %17 : vector<128x128xi1>, vector<128x128xf32>
    %cst_13 = arith.constant dense<0xFF800000> : vector<128xf32>
    %19 = vector.multi_reduction <maximumf>, %18, %cst_13 [1] : vector<128x128xf32> to vector<128xf32>
    %20 = vector.shape_cast %19 : vector<128xf32> to vector<128x1xf32>
    %21 = vector.broadcast %20 : vector<128x1xf32> to vector<128x128xf32>
    %22 = arith.subf %18, %21 : vector<128x128xf32>
    %23 = math.exp %22 : vector<128x128xf32>
    %cst_14 = arith.constant dense<0.000000e+00> : vector<128xf32>
    %24 = vector.multi_reduction <add>, %23, %cst_14 [1] : vector<128x128xf32> to vector<128xf32>
    %25 = vector.shape_cast %24 : vector<128xf32> to vector<128x1xf32>
    %26 = tpu.reciprocal %25 {approx = true} : vector<128x1xf32> -> vector<128x1xf32>
    %27 = vector.broadcast %26 : vector<128x1xf32> to vector<128x128xf32>
    %28 = arith.mulf %23, %27 : vector<128x128xf32>
    %29 = arith.truncf %28 : vector<128x128xf32> to vector<128x128xbf16>
    %30 = arith.truncf %7 : vector<128x64xf32> to vector<128x64xbf16>
    %cst_15 = arith.constant dense<0.000000e+00> : vector<128x64xf32>
    %31 = tpu.matmul %29, %30, %cst_15 {dimension_numbers = #tpu.dot_dimension_numbers<[1], [0], [0], [1], [0, 0, 1, 1], [], []>} : vector<128x128xbf16>, vector<128x64xbf16>, vector<128x64xf32> -> vector<128x64xf32>
    %c0_16 = arith.constant 0 : index
    %c0_17 = arith.constant 0 : index
    %c0_18 = arith.constant 0 : index
    %32 = vector.load %arg5[%c0_16, %c0_17, %c0_18] : memref<1x128x64xf32, #tpu.memory_space<vmem>>, vector<1x128x64xf32>
    %33 = vector.shape_cast %32 : vector<1x128x64xf32> to vector<128x64xf32>
    %34 = vector.shape_cast %31 : vector<128x64xf32> to vector<1x128x64xf32>
    tpu.vector_store %arg5[%c0_16, %c0_17, %c0_18], %34 {strides = array<i32>} : memref<1x128x64xf32, #tpu.memory_space<vmem>>, vector<1x128x64xf32>,
    return
  }
  func.func @transform_0(%arg0: i32) -> (i32, i32, i32) {
    %c0_i32 = arith.constant 0 : i32
    %c0_i32_0 = arith.constant 0 : i32
    %c0_i32_1 = arith.constant 0 : i32
    return %arg0, %c0_i32, %c0_i32_0 : i32, i32, i32
  }
  func.func @transform_1(%arg0: i32) -> (i32, i32) {
    %c0_i32 = arith.constant 0 : i32
    %c0_i32_0 = arith.constant 0 : i32
    %c0_i32_1 = arith.constant 0 : i32
    return %c0_i32, %c0_i32_0 : i32, i32
  }
  func.func @transform_2(%arg0: i32) -> (i32, i32) {
    %c0_i32 = arith.constant 0 : i32
    %c0_i32_0 = arith.constant 0 : i32
    %c0_i32_1 = arith.constant 0 : i32
    return %c0_i32, %c0_i32_0 : i32, i32
  }
  func.func @transform_3(%arg0: i32) -> (i32, i32) {
    %c0_i32 = arith.constant 0 : i32
    %c0_i32_0 = arith.constant 0 : i32
    %c0_i32_1 = arith.constant 0 : i32
    return %c0_i32, %c0_i32_0 : i32, i32
  }
  func.func @transform_4(%arg0: i32) -> (i32, i32, i32) {
    %c0_i32 = arith.constant 0 : i32
    %c0_i32_0 = arith.constant 0 : i32
    %c0_i32_1 = arith.constant 0 : i32
    return %arg0, %c0_i32, %c0_i32_0 : i32, i32, i32
  }
}

</mosaic_0001>

<bundles_post_ra>
// kernel: head_attention.1
= control target key start
LH: loop header
LB: loop body
LE: loop exit
PB: predicated region body
PF: predicated region fallthrough
CT: control target
= control target key end

     0   :  { %s2825_s15 = smov 0   ;;  %s3700_s0 = inlined_call_operand.vmem [shape: bf16[2,128,400], index: 0, kind: input, shape index: {}]   ;;  %s3701_s1 = inlined_call_operand.vmem [shape: bf16[400,64], index: 1, kind: input, shape index: {}]   ;;  %s3702_s2 = inlined_call_operand.vmem [shape: bf16[400,64], index: 2, kind: input, shape index: {}]   ;;  %s3703_s3 = inlined_call_operand.vmem [shape: bf16[400,64], index: 3, kind: input, shape index: {}]   ;;  %s3704_s4 = inlined_call_operand.vmem [shape: f32[2,128,64], index: 4, kind: output, shape index: {}]  }
   0x1 LB: > { %s2147_s16 = sadd.s32 4294967295, %s2797_s15   ;;  %p2151_p0 = scmp.ge.s32.totalorder %s2797_s15, 1  ;;  %s2797_s15 = sphi %s2825_s15, %s14_s15  }
   0x2   : > { %p162_p1 = scmp.lt.s32.totalorder %s2797_s15, 3 }
   0x4   : > { %p163_p2 = pnand %p2151_p0, %p162_p1 }
   0x6   : > { %166 = sbr.rel (%p163_p2) target bundleno = 1177 (0x499), region = 36 }
   0xb   : > { %v2604_v0 = vld [vmem:[%s3701_s1 + $0x78] sm:$0xff]   ;;  %v2799_v1 = vmov 0   ;;  %v2607_v4 = vld [vmem:[%s3701_s1 + $0x70] sm:$0xff]   ;;  %v2610_v7 = vld [vmem:[%s3701_s1 + $0x68] sm:$0xff]   ;;  %p188_p3 = scmp.lt.s32.totalorder %s2147_s16, 1  ;;  %vm583_vm0 = vcmask 130048  }
   0xc   : > { %705 = vmatprep.subr.bf16.mxu1 %v2799_v1  ;;  %v2605_v2 = vld [vmem:[%s3701_s1 + $0xb8] sm:$0xff]   ;;  %2299 = vmatprep.subr.bf16.mxu0 %v2604_v0  ;;  %v2608_v5 = vld [vmem:[%s3701_s1 + $0xb0] sm:$0xff]   ;;  %v2611_v8 = vld [vmem:[%s3701_s1 + $0xa8] sm:$0xff]   ;;  %vm1606_vm1 = vcmask 523264  }
   0xd   : > { %v2606_v3 = vld [vmem:[%s3701_s1 + $0x38] sm:$0xff]   ;;  %706 = vmatpush1.bf16.msra.mxu1 %v2605_v2  ;;  %v2609_v6 = vld [vmem:[%s3701_s1 + $0x30] sm:$0xff]   ;;  %v2612_v9 = vld [vmem:[%s3701_s1 + $0x28] sm:$0xff]   ;;  %s3719_s16 = smov (!%p188_p3, %s2147_s16), 1 }
   0xe   : > { %2300 = vmatpush3.bf16.msra.mxu0 %v2606_v3  ;;  %707 = vmatprep.subr.bf16.mxu1 %v2799_v1  ;;  %v2613_v10 = vld [vmem:[%s3701_s1 + $0x60] sm:$0xff]   ;;  %v2616_v13 = vld [vmem:[%s3701_s1 + $0x58] sm:$0xff]   ;;  %v2619_v16 = vld [vmem:[%s3701_s1 + $0x50] sm:$0xff]   ;;  %s2297_s25 = sshll.u32 %s3719_s16, 8  ;;  %s2298_s29 = sshll.u32 %s3719_s16, 7 }
   0xf   : > { %2301 = vmatprep.subr.bf16.mxu0 %v2607_v4  ;;  %v2614_v11 = vld [vmem:[%s3701_s1 + $0xa0] sm:$0xff]   ;;  %v2617_v14 = vld [vmem:[%s3701_s1 + $0x98] sm:$0xff]   ;;  %v2620_v17 = vld [vmem:[%s3701_s1 + $0x90] sm:$0xff]   ;;  %s2906_s8 = scalar_lea.vmem %s3700_s0, %s2297_s25  ;;  %s3663_s6 = scalar_lea.vmem %s3704_s4, %s2298_s29 }
  0x10   : > { %v2615_v12 = vld [vmem:[%s3701_s1 + $0x20] sm:$0xff]   ;;  %v2618_v15 = vld [vmem:[%s3701_s1 + $0x18] sm:$0xff]   ;;  %v2621_v18 = vld [vmem:[%s3701_s1 + $0x10] sm:$0xff]  }
  0x11   : > { %708 = vmatpush1.bf16.msra.mxu1 %v2608_v5  ;;  %v2622_v19 = vld [vmem:[%s3701_s1 + $0x48] sm:$0xff]   ;;  %v2916_v22 = vld [vmem:[%s2906_s8 + $0x4] ss:$16 sps:$4 sm:$0xff]   ;;  %v2632_v26 = vld [vmem:[%s3702_s2 + $0x78] sm:$0xff]  }
  0x12   : > { %2302 = vmatpush3.bf16.msra.mxu0 %v2609_v6  ;;  %709 = vmatprep.subr.bf16.mxu1 %v2799_v1  ;;  %v2623_v20 = vld [vmem:[%s3701_s1 + $0x88] sm:$0xff]   ;;  %v2625_v23 = vld [vmem:[%s3701_s1 + $0x40] sm:$0xff]   ;;  %v2633_v30 = vld [vmem:[%s3702_s2 + $0x38] sm:$0xff]  }
  0x13   : > { %2303 = vmatprep.subr.bf16.mxu0 %v2610_v7  ;;  %v2624_v21 = vld [vmem:[%s3701_s1 + $0x8] sm:$0xff]   ;;  %640 = vmatprep.mubr.bf16.mxu0 %v2916_v22  ;;  %v2626_v24 = vld [vmem:[%s3701_s1 + $0x80] sm:$0xff]   ;;  %v2641_v33 = vld [vmem:[%s3702_s2 + $0x70] sm:$0xff]  }
  0x14   : > { %v2627_v25 = vld [vmem:[%s3701_s1] sm:$0xff]   ;;  %v2933_v27 = vld [vmem:[%s2906_s8 + $0xc] ss:$16 sps:$4 sm:$0xff]   ;;  %v2948_v31 = vld [vmem:[%s2906_s8 + $0x8] ss:$16 sps:$4 sm:$0xff]  }
  0x15   : > { %710 = vmatpush1.bf16.msra.mxu1 %v2611_v8  ;;  %v2936_v28 = vld [vmem:[%s2906_s8] ss:$16 sps:$4 sm:$0xff]   ;;  %2213 = vmatprep.mubr.msk.bf16.mxu1 %vm583_vm0, %v2933_v27  ;;  %v2951_v32 = vld [vmem:[%s2906_s8 + $0x24] ss:$16 sps:$4 sm:$0xff]   ;;  %v2637_v34 = vld [vmem:[%s3702_s2 + $0xb8] sm:$0xff]  }
  0x16   : > { %2304 = vmatpush3.bf16.msra.mxu0 %v2612_v9  ;;  %711 = vmatprep.subr.bf16.mxu1 %v2799_v1  ;;  %v2631_v29 = vld [vmem:[%s3701_s1 + $0xc0] sm:$0xff]   ;;  %v2961_v35 = vld [vmem:[%s2906_s8 + $0x2c] ss:$16 sps:$4 sm:$0xff]   ;;  %v2642_v36 = vld [vmem:[%s3702_s2 + $0x30] sm:$0xff]  }
  0x17   : > { %2305 = vmatprep.subr.bf16.mxu0 %v2613_v10  ;;  %v2969_v37 = vld [vmem:[%s2906_s8 + $0x20] ss:$16 sps:$4 sm:$0xff]   ;;  %v2650_v38 = vld [vmem:[%s3702_s2 + $0x68] sm:$0xff]   ;;  %v2982_v40 = vld [vmem:[%s2906_s8 + $0x44] ss:$16 sps:$4 sm:$0xff]  }
  0x18   : > { %v2646_v39 = vld [vmem:[%s3702_s2 + $0xb0] sm:$0xff]   ;;  %v2651_v41 = vld [vmem:[%s3702_s2 + $0x28] sm:$0xff]   ;;  %v2659_v45 = vld [vmem:[%s3702_s2 + $0x60] sm:$0xff]  }
  0x19   : > { %712 = vmatpush1.bf16.msra.mxu1 %v2614_v11  ;;  %v2988_v42 = vld [vmem:[%s2906_s8 + $0x28] ss:$16 sps:$4 sm:$0xff]   ;;  %v2991_v43 = vld [vmem:[%s2906_s8 + $0x4c] ss:$16 sps:$4 sm:$0xff]   ;;  %v2660_v46 = vld [vmem:[%s3702_s2 + $0x20] sm:$0xff]  }
  0x1a   : > { %2306 = vmatpush3.bf16.msra.mxu0 %v2615_v12  ;;  %713 = vmatprep.subr.bf16.mxu1 %v2799_v1  ;;  %v2655_v44 = vld [vmem:[%s3702_s2 + $0xa8] sm:$0xff]   ;;  %v3007_v47 = vld [vmem:[%s2906_s8 + $0x40] ss:$16 sps:$4 sm:$0xff]   ;;  %v3018_v50 = vld [vmem:[%s2906_s8 + $0x64] ss:$16 sps:$4 sm:$0xff]  }
  0x1b   : > { %2307 = vmatprep.subr.bf16.mxu0 %v2616_v13  ;;  %v2664_v48 = vld [vmem:[%s3702_s2 + $0xa0] sm:$0xff]   ;;  %v3015_v49 = vld [vmem:[%s2906_s8 + $0x48] ss:$16 sps:$4 sm:$0xff]   ;;  %v3029_v53 = vld [vmem:[%s2906_s8 + $0x6c] ss:$16 sps:$4 sm:$0xff]  }
  0x1c   : > { %v2668_v51 = vld [vmem:[%s3702_s2 + $0x58] sm:$0xff]   ;;  %v3038_v55 = vld [vmem:[%s2906_s8 + $0x60] ss:$16 sps:$4 sm:$0xff]   ;;  %v3041_v56 = vld [vmem:[%s2906_s8 + $0x84] ss:$16 sps:$4 sm:$0xff]  }
  0x1d   : > { %714 = vmatpush1.bf16.msra.mxu1 %v2617_v14  ;;  %v2669_v52 = vld [vmem:[%s3702_s2 + $0x18] sm:$0xff]   ;;  %v2677_v57 = vld [vmem:[%s3702_s2 + $0x50] sm:$0xff]   ;;  %v2686_v63 = vld [vmem:[%s3702_s2 + $0x48] sm:$0xff]  }
  0x1e   : > { %2308 = vmatpush3.bf16.msra.mxu0 %v2618_v15  ;;  %715 = vmatprep.subr.bf16.mxu1 %v2799_v1  ;;  %v2672_v54 = vld [vmem:[%s3702_s2 + $0x98] sm:$0xff]   ;;  %v2678_v58 = vld [vmem:[%s3702_s2 + $0x10] sm:$0xff]   ;;  %v2687_v0 = vld [vmem:[%s3702_s2 + $0x88] sm:$0xff]  }
  0x1f   : > { %2309 = vmatprep.subr.bf16.mxu0 %v2619_v16  ;;  %v2679_v59 = vld [vmem:[%s3702_s2 + $0x90] sm:$0xff]   ;;  %v3056_v60 = vld [vmem:[%s2906_s8 + $0x68] ss:$16 sps:$4 sm:$0xff]   ;;  %v3060_v61 = vld [vmem:[%s2906_s8 + $0x8c] ss:$16 sps:$4 sm:$0xff]  }
  0x20   : > { %v3065_v62 = vld [vmem:[%s2906_s8 + $0x80] ss:$16 sps:$4 sm:$0xff]   ;;  %v2688_v2 = vld [vmem:[%s3702_s2 + $0x8] sm:$0xff]   ;;  %v3080_v3 = vld [vmem:[%s2906_s8 + $0xa4] ss:$16 sps:$4 sm:$0xff]  }
  0x21   : > { %716 = vmatpush1.bf16.msra.mxu1 %v2620_v17  ;;  %v3083_v4 = vld [vmem:[%s2906_s8 + $0x88] ss:$16 sps:$4 sm:$0xff]   ;;  %v3087_v5 = vld [vmem:[%s2906_s8 + $0xac] ss:$16 sps:$4 sm:$0xff]   ;;  %v2694_v6 = vld [vmem:[%s3702_s2 + $0x80] sm:$0xff]  }
  0x22   : > { %2310 = vmatpush3.bf16.msra.mxu0 %v2621_v18  ;;  %717 = vmatprep.subr.bf16.mxu1 %v2799_v1  ;;  %v2696_v7 = vld [vmem:[%s3702_s2 + $0x40] sm:$0xff]   ;;  %v2702_v12 = vld [vmem:[%s3703_s3 + $0x78] sm:$0xff]  }
  0x23   : > { %2311 = vmatprep.subr.bf16.mxu0 %v2622_v19  ;;  %v2697_v8 = vld [vmem:[%s3702_s2] sm:$0xff]   ;;  %v3117_v13 = vld [vmem:[%s2906_s8 + $0xa8] ss:$16 sps:$4 sm:$0xff]   ;;  %v3122_v14 = vld [vmem:[%s2906_s8 + $0xcc] ss:$16 sps:$4 sm:$0xff]  }
  0x24   : > { %v3101_v9 = vld [vmem:[%s2906_s8 + $0xa0] ss:$16 sps:$4 sm:$0xff]   ;;  %v3106_v10 = vld [vmem:[%s2906_s8 + $0xc4] ss:$16 sps:$4 sm:$0xff]   ;;  %v3135_v17 = vld [vmem:[%s2906_s8 + $0xc8] ss:$16 sps:$4 sm:$0xff]  }
  0x25   : > { %718 = vmatpush1.bf16.msra.mxu1 %v2623_v20  ;;  %v2701_v11 = vld [vmem:[%s3702_s2 + $0xc0] sm:$0xff]   ;;  %v3139_v18 = vld [vmem:[%s2906_s8 + $0xec] ss:$16 sps:$4 sm:$0xff]   ;;  %v3149_v20 = vld [vmem:[%s2906_s8 + $0xe8] ss:$16 sps:$4 sm:$0xff]  }
  0x26   : > { %2312 = vmatpush3.bf16.msra.mxu0 %v2624_v21  ;;  %719 = vmatprep.subr.bf16.mxu1 %v2799_v1  ;;  %v3127_v15 = vld [vmem:[%s2906_s8 + $0xc0] ss:$16 sps:$4 sm:$0xff]   ;;  %v3132_v16 = vld [vmem:[%s2906_s8 + $0xe4] ss:$16 sps:$4 sm:$0xff]   ;;  %v2703_v21 = vld [vmem:[%s3703_s3 + $0x38] sm:$0xff]  }
  0x27   : > { %2313 = vmatprep.subr.bf16.mxu0 %v2625_v23  ;;  %v3144_v19 = vld [vmem:[%s2906_s8 + $0xe0] ss:$16 sps:$4 sm:$0xff]  }
  0x28   : > { %v2704_v23 = vld [vmem:[%s3703_s3 + $0x70] sm:$0xff]  }
  0x29   : > { %720 = vmatpush1.bf16.msra.mxu1 %v2626_v24  ;;  %v2705_v24 = vld [vmem:[%s3703_s3 + $0x30] sm:$0xff]  }
  0x2a   : > { %2314 = vmatpush3.bf16.msra.mxu0 %v2627_v25  ;;  %735 = vmatprep.subr.bf16.mxu1 %v2799_v1  ;;  %v2706_v25 = vld [vmem:[%s3703_s3 + $0x68] sm:$0xff]  }
  0x2b   : > { %2363 = vmatprep.subr.bf16.mxu0 %v2632_v26  ;;  %v2707_v26 = vld [vmem:[%s3703_s3 + $0x28] sm:$0xff]  }
  0x2d   : > { %641 = vmatmul.mubr.bf16.vlgmr.msra.gmra.mxu0 %v2936_v28  ;;  %736 = vmatpush2.bf16.msra.mxu1 %v2631_v29  ;;  %v2708_v29 = vld [vmem:[%s3703_s3 + $0x60] sm:$0xff]  }
  0x2e   : > { %2364 = vmatpush3.bf16.msra.mxu0 %v2633_v30  ;;  %1099 = vmatprep.subr.bf16.mxu1 %v2799_v1  ;;  %v2709_v30 = vld [vmem:[%s3703_s3 + $0x20] sm:$0xff]  }
  0x2f   : > { %648 = vmatprep.mubr.bf16.mxu0 %v2951_v32  ;;  %2365 = vmatprep.subr.bf16.mxu0 %v2641_v33  ;;  %v2718_v33 = vld [vmem:[%s3703_s3 + $0xb8] sm:$0xff]  }
  0x30   : > { %738 = vmatmul.mubr.bf16.vlgmr.msra.gmra.mxu1 %v2948_v31 }
  0x31   : > { %1100 = vmatpush1.bf16.msra.mxu1 %v2637_v34  ;;  %2214 = vmatprep.mubr.msk.bf16.mxu1 %vm583_vm0, %v2961_v35  ;;  %v2710_v34 = vld [vmem:[%s3703_s3 + $0x58] sm:$0xff]  }
  0x32   : > { %2366 = vmatpush3.bf16.msra.mxu0 %v2642_v36  ;;  %1101 = vmatprep.subr.bf16.mxu1 %v2799_v1  ;;  %v2711_v36 = vld [vmem:[%s3703_s3 + $0x18] sm:$0xff]  }
  0x33   : > { %2367 = vmatprep.subr.bf16.mxu0 %v2650_v38  ;;  %v2719_v38 = vld [vmem:[%s3703_s3 + $0xb0] sm:$0xff]  }
  0x35   : > { %649 = vmatmul.mubr.bf16.gmra.mxu0 %v2969_v37  ;;  %1102 = vmatpush1.bf16.msra.mxu1 %v2646_v39  ;;  %v2712_v39 = vld [vmem:[%s3703_s3 + $0x50] sm:$0xff]  }
  0x36   : > { %656 = vmatprep.mubr.bf16.mxu0 %v2982_v40  ;;  %2368 = vmatpush3.bf16.msra.mxu0 %v2651_v41  ;;  %v2713_v41 = vld [vmem:[%s3703_s3 + $0x10] sm:$0xff]  }
  0x37   : > { %1103 = vmatprep.subr.bf16.mxu1 %v2799_v1  ;;  %2369 = vmatprep.subr.bf16.mxu0 %v2659_v45  ;;  %v2714_v45 = vld [vmem:[%s3703_s3 + $0x48] sm:$0xff]  }
  0x38   : > { %746 = vmatmul.mubr.bf16.gmra.mxu1 %v2988_v42 }
  0x39   : > { %2215 = vmatprep.mubr.msk.bf16.mxu1 %vm583_vm0, %v2991_v43  ;;  %1104 = vmatpush1.bf16.msra.mxu1 %v2655_v44  ;;  %v2720_v44 = vld [vmem:[%s3703_s3 + $0xa8] sm:$0xff]  }
  0x3a   : > { %2370 = vmatpush3.bf16.msra.mxu0 %v2660_v46  ;;  %1105 = vmatprep.subr.bf16.mxu1 %v2799_v1  ;;  %v2715_v46 = vld [vmem:[%s3703_s3 + $0x8] sm:$0xff]  }
  0x3b   : > { %2371 = vmatprep.subr.bf16.mxu0 %v2668_v51  ;;  %v2716_v51 = vld [vmem:[%s3703_s3 + $0x40] sm:$0xff]  }
  0x3d   : > { %657 = vmatmul.mubr.bf16.gmra.mxu0 %v3007_v47  ;;  %1106 = vmatpush1.bf16.msra.mxu1 %v2664_v48  ;;  %v2721_v48 = vld [vmem:[%s3703_s3 + $0xa0] sm:$0xff]  }
  0x3e   : > { %664 = vmatprep.mubr.bf16.mxu0 %v3018_v50  ;;  %2372 = vmatpush3.bf16.msra.mxu0 %v2669_v52  ;;  %v2717_v52 = vld [vmem:[%s3703_s3] sm:$0xff]  }
  0x3f   : > { %1107 = vmatprep.subr.bf16.mxu1 %v2799_v1  ;;  %2373 = vmatprep.subr.bf16.mxu0 %v2677_v57  ;;  %v2723_v57 = vld [vmem:[%s3703_s3 + $0x90] sm:$0xff]  }
  0x40   : > { %754 = vmatmul.mubr.bf16.gmra.mxu1 %v3015_v49 }
  0x41   : > { %2216 = vmatprep.mubr.msk.bf16.mxu1 %vm583_vm0, %v3029_v53  ;;  %1108 = vmatpush1.bf16.msra.mxu1 %v2672_v54  ;;  %v2722_v54 = vld [vmem:[%s3703_s3 + $0x98] sm:$0xff]  }
  0x42   : > { %1109 = vmatprep.subr.bf16.mxu1 %v2799_v1  ;;  %2374 = vmatpush3.bf16.msra.mxu0 %v2678_v58  ;;  %v2724_v58 = vld [vmem:[%s3703_s3 + $0x88] sm:$0xff]  }
  0x43   : > { %2375 = vmatprep.subr.bf16.mxu0 %v2686_v63  ;;  %v2726_v63 = vld [vmem:[%s3703_s3 + $0xc0] sm:$0xff]  }
  0x45   : > { %665 = vmatmul.mubr.bf16.gmra.mxu0 %v3038_v55  ;;  %1110 = vmatpush1.bf16.msra.mxu1 %v2679_v59  ;;  %v2725_v59 = vld [vmem:[%s3703_s3 + $0x80] sm:$0xff]  }
  0x46   : > { %672 = vmatprep.mubr.bf16.mxu0 %v3041_v56  ;;  %1111 = vmatprep.subr.bf16.mxu1 %v2799_v1 }
  0x47   : > { %2376 = vmatpush3.bf16.msra.mxu0 %v2688_v2 }
  0x48   : > { %762 = vmatmul.mubr.bf16.gmra.mxu1 %v3056_v60  ;;  %2377 = vmatprep.subr.bf16.mxu0 %v2696_v7 }
  0x49   : > { %2217 = vmatprep.mubr.msk.bf16.mxu1 %vm583_vm0, %v3060_v61  ;;  %1112 = vmatpush1.bf16.msra.mxu1 %v2687_v0 }
  0x4a   : > { %1113 = vmatprep.subr.bf16.mxu1 %v2799_v1 }
  0x4b   : > { %2378 = vmatpush3.bf16.msra.mxu0 %v2697_v8 }
  0x4c   : > { %2427 = vmatprep.subr.bf16.mxu0 %v2702_v12 }
  0x4d   : > { %673 = vmatmul.mubr.bf16.gmra.mxu0 %v3065_v62  ;;  %1114 = vmatpush1.bf16.msra.mxu1 %v2694_v6 }
  0x4e   : > { %680 = vmatprep.mubr.bf16.mxu0 %v3080_v3  ;;  %1129 = vmatprep.subr.bf16.mxu1 %v2799_v1 }
  0x50   : > { %770 = vmatmul.mubr.bf16.gmra.mxu1 %v3083_v4 }
  0x51   : > { %2218 = vmatprep.mubr.msk.bf16.mxu1 %vm583_vm0, %v3087_v5  ;;  %1130 = vmatpush2.bf16.msra.mxu1 %v2701_v11 }
  0x52   : > { %1493 = vmatprep.subr.bf16.mxu1 %v2799_v1 }
  0x55   : > { %681 = vmatmul.mubr.bf16.gmra.mxu0 %v3101_v9 }
  0x56   : > { %688 = vmatprep.mubr.bf16.mxu0 %v3106_v10 }
  0x58   : > { %778 = vmatmul.mubr.bf16.gmra.mxu1 %v3117_v13 }
  0x59   : > { %2219 = vmatprep.mubr.msk.bf16.mxu1 %vm583_vm0, %v3122_v14 }
  0x5d   : > { %689 = vmatmul.mubr.bf16.gmra.mxu0 %v3127_v15 }
  0x5e   : > { %696 = vmatprep.mubr.bf16.mxu0 %v3132_v16 }
  0x60   : > { %786 = vmatmul.mubr.bf16.gmra.mxu1 %v3135_v17 }
  0x61   : > { %2220 = vmatprep.mubr.msk.bf16.mxu1 %vm583_vm0, %v3139_v18 }
  0x65   : > { %697 = vmatmul.mubr.bf16.gmra.mxu0 %v3144_v19 }
  0x66   : > { %1034 = vmatprep.mubr.bf16.mxu0 %v2916_v22 }
  0x68   : > { %794 = vmatmul.mubr.bf16.gmra.mxu1 %v3149_v20 }
  0x69   : > { %2246 = vmatprep.mubr.msk.bf16.mxu1 %vm583_vm0, %v2933_v27 }
  0x6d   : > { %1035 = vmatmul.mubr.bf16.vlgmr.msra.gmra.mxu0 %v2936_v28 }
  0x6e   : > { %1042 = vmatprep.mubr.bf16.mxu0 %v2951_v32  ;;  %2428 = vmatpush3.bf16.msra.mxu0 %v2703_v21 }
  0x6f   : > { %2429 = vmatprep.subr.bf16.mxu0 %v2704_v23 }
  0x70   : > { %1132 = vmatmul.mubr.bf16.vlgmr.msra.gmra.mxu1 %v2948_v31 }
  0x71   : > { %2247 = vmatprep.mubr.msk.bf16.mxu1 %vm583_vm0, %v2961_v35  ;;  %1494 = vmatpush1.bf16.msra.mxu1 %v2718_v33 }
  0x72   : > { %2430 = vmatpush3.bf16.msra.mxu0 %v2705_v24  ;;  %1495 = vmatprep.subr.bf16.mxu1 %v2799_v1 }
  0x73   : > { %2431 = vmatprep.subr.bf16.mxu0 %v2706_v25 }
  0x75   : > { %1043 = vmatmul.mubr.bf16.gmra.mxu0 %v2969_v37  ;;  %1496 = vmatpush1.bf16.msra.mxu1 %v2719_v38 }
  0x76   : > { %1050 = vmatprep.mubr.bf16.mxu0 %v2982_v40  ;;  %2432 = vmatpush3.bf16.msra.mxu0 %v2707_v26 }
  0x77   : > { %2433 = vmatprep.subr.bf16.mxu0 %v2708_v29  ;;  %1497 = vmatprep.subr.bf16.mxu1 %v2799_v1 }
  0x78   : > { %1140 = vmatmul.mubr.bf16.gmra.mxu1 %v2988_v42 }
  0x79   : > { %2248 = vmatprep.mubr.msk.bf16.mxu1 %vm583_vm0, %v2991_v43  ;;  %1498 = vmatpush1.bf16.msra.mxu1 %v2720_v44 }
  0x7a   : > { %2434 = vmatpush3.bf16.msra.mxu0 %v2709_v30  ;;  %1499 = vmatprep.subr.bf16.mxu1 %v2799_v1 }
  0x7b   : > { %2435 = vmatprep.subr.bf16.mxu0 %v2710_v34 }
  0x7d   : > { %1051 = vmatmul.mubr.bf16.gmra.mxu0 %v3007_v47  ;;  %1500 = vmatpush1.bf16.msra.mxu1 %v2721_v48 }
  0x7e   : > { %1058 = vmatprep.mubr.bf16.mxu0 %v3018_v50  ;;  %2436 = vmatpush3.bf16.msra.mxu0 %v2711_v36 }
  0x7f   : > { %2437 = vmatprep.subr.bf16.mxu0 %v2712_v39  ;;  %1501 = vmatprep.subr.bf16.mxu1 %v2799_v1 }
  0x80   : > { %1148 = vmatmul.mubr.bf16.gmra.mxu1 %v3015_v49 }
  0x81   : > { %2249 = vmatprep.mubr.msk.bf16.mxu1 %vm583_vm0, %v3029_v53  ;;  %1502 = vmatpush1.bf16.msra.mxu1 %v2722_v54 }
  0x82   : > { %2438 = vmatpush3.bf16.msra.mxu0 %v2713_v41  ;;  %1503 = vmatprep.subr.bf16.mxu1 %v2799_v1 }
  0x83   : > { %2439 = vmatprep.subr.bf16.mxu0 %v2714_v45 }
  0x85   : > { %1059 = vmatmul.mubr.bf16.gmra.mxu0 %v3038_v55  ;;  %1504 = vmatpush1.bf16.msra.mxu1 %v2723_v57 }
  0x86   : > { %1066 = vmatprep.mubr.bf16.mxu0 %v3041_v56  ;;  %2440 = vmatpush3.bf16.msra.mxu0 %v2715_v46 }
  0x87   : > { %2441 = vmatprep.subr.bf16.mxu0 %v2716_v51  ;;  %1505 = vmatprep.subr.bf16.mxu1 %v2799_v1 }
  0x88   : > { %1156 = vmatmul.mubr.bf16.gmra.mxu1 %v3056_v60 }
  0x89   : > { %2250 = vmatprep.mubr.msk.bf16.mxu1 %vm583_vm0, %v3060_v61  ;;  %1506 = vmatpush1.bf16.msra.mxu1 %v2724_v58 }
  0x8a   : > { %2442 = vmatpush3.bf16.msra.mxu0 %v2717_v52  ;;  %1507 = vmatprep.subr.bf16.mxu1 %v2799_v1 }
  0x8d   : > { %1067 = vmatmul.mubr.bf16.gmra.mxu0 %v3065_v62  ;;  %1508 = vmatpush1.bf16.msra.mxu1 %v2725_v59 }
  0x8e   : > { %1074 = vmatprep.mubr.bf16.mxu0 %v3080_v3  ;;  %1523 = vmatprep.subr.bf16.mxu1 %v2799_v1 }
  0x90   : > { %1164 = vmatmul.mubr.bf16.gmra.mxu1 %v3083_v4 }
  0x91   : > { %2251 = vmatprep.mubr.msk.bf16.mxu1 %vm583_vm0, %v3087_v5  ;;  %1524 = vmatpush2.bf16.msra.mxu1 %v2726_v63 }
  0x95   : > { %1075 = vmatmul.mubr.bf16.gmra.mxu0 %v3101_v9 }
  0x96   : > { %1082 = vmatprep.mubr.bf16.mxu0 %v3106_v10 }
  0x98   : > { %1172 = vmatmul.mubr.bf16.gmra.mxu1 %v3117_v13 }
  0x99   : > { %2252 = vmatprep.mubr.msk.bf16.mxu1 %vm583_vm0, %v3122_v14 }
  0x9d   : > { %1083 = vmatmul.mubr.bf16.gmra.mxu0 %v3127_v15 }
  0x9e   : > { %1090 = vmatprep.mubr.bf16.mxu0 %v3132_v16 }
  0xa0   : > { %1180 = vmatmul.mubr.bf16.gmra.mxu1 %v3135_v17 }
  0xa1   : > { %2253 = vmatprep.mubr.msk.bf16.mxu1 %vm583_vm0, %v3139_v18 }
  0xa5   : > { %1091 = vmatmul.mubr.bf16.gmra.mxu0 %v3144_v19 }
  0xa6   : > { %1428 = vmatprep.mubr.bf16.mxu0 %v2916_v22 }
  0xa8   : > { %1188 = vmatmul.mubr.bf16.gmra.mxu1 %v3149_v20 }
  0xa9   : > { %2279 = vmatprep.mubr.msk.bf16.mxu1 %vm583_vm0, %v2933_v27 }
  0xad   : > { %1429 = vmatmul.mubr.bf16.vlgmr.msra.gmra.mxu0 %v2936_v28 }
  0xae   : > { %1436 = vmatprep.mubr.bf16.mxu0 %v2951_v32 }
  0xb0   : > { %1526 = vmatmul.mubr.bf16.vlgmr.msra.gmra.mxu1 %v2948_v31 }
  0xb1   : > { %2280 = vmatprep.mubr.msk.bf16.mxu1 %vm583_vm0, %v2961_v35 }
  0xb5   : > { %1437 = vmatmul.mubr.bf16.gmra.mxu0 %v2969_v37 }
  0xb6   : > { %1444 = vmatprep.mubr.bf16.mxu0 %v2982_v40 }
  0xb8   : > { %1534 = vmatmul.mubr.bf16.gmra.mxu1 %v2988_v42 }
  0xb9   : > { %2281 = vmatprep.mubr.msk.bf16.mxu1 %vm583_vm0, %v2991_v43 }
  0xbd   : > { %1445 = vmatmul.mubr.bf16.gmra.mxu0 %v3007_v47 }
  0xbe   : > { %1452 = vmatprep.mubr.bf16.mxu0 %v3018_v50 }
  0xc0   : > { %1542 = vmatmul.mubr.bf16.gmra.mxu1 %v3015_v49 }
  0xc1   : > { %2282 = vmatprep.mubr.msk.bf16.mxu1 %vm583_vm0, %v3029_v53 }
  0xc5   : > { %1453 = vmatmul.mubr.bf16.gmra.mxu0 %v3038_v55 }
  0xc6   : > { %1460 = vmatprep.mubr.bf16.mxu0 %v3041_v56 }
  0xc8   : > { %1550 = vmatmul.mubr.bf16.gmra.mxu1 %v3056_v60 }
  0xc9   : > { %2283 = vmatprep.mubr.msk.bf16.mxu1 %vm583_vm0, %v3060_v61 }
  0xcd   : > { %1461 = vmatmul.mubr.bf16.gmra.mxu0 %v3065_v62 }
  0xce   : > { %1468 = vmatprep.mubr.bf16.mxu0 %v3080_v3 }
  0xd0   : > { %1558 = vmatmul.mubr.bf16.gmra.mxu1 %v3083_v4 }
  0xd1   : > { %2284 = vmatprep.mubr.msk.bf16.mxu1 %vm583_vm0, %v3087_v5 }
  0xd5   : > { %1469 = vmatmul.mubr.bf16.gmra.mxu0 %v3101_v9 }
  0xd6   : > { %1476 = vmatprep.mubr.bf16.mxu0 %v3106_v10 }
  0xd8   : > { %1566 = vmatmul.mubr.bf16.gmra.mxu1 %v3117_v13 }
  0xd9   : > { %2285 = vmatprep.mubr.msk.bf16.mxu1 %vm583_vm0, %v3122_v14 }
  0xdd   : > { %1477 = vmatmul.mubr.bf16.gmra.mxu0 %v3127_v15 }
  0xde   : > { %1484 = vmatprep.mubr.bf16.mxu0 %v3132_v16 }
  0xe0   : > { %1574 = vmatmul.mubr.bf16.gmra.mxu1 %v3135_v17 }
  0xe1   : > { %2286 = vmatprep.mubr.msk.bf16.mxu1 %vm583_vm0, %v3139_v18 }
  0xe5   : > { %1485 = vmatmul.mubr.bf16.gmra.mxu0 %v3144_v19 }
  0xe8   : > { %1582 = vmatmul.mubr.bf16.gmra.mxu1 %v3149_v20 }
  0xed   : > { %v2315_v1 = vpop.f32.mrf.mxu0 }
  0xef   : > { %v2316_v22 = vpop.f32.mrf.mxu0 }
  0xf0   : > { %v739_v27 = vpop.f32.mrf.mxu1  ;;  %v2317_v31 = vadd.f32 %v2316_v22, %v2315_v1 }
  0xf1   : > { %v2318_v28 = vpop.f32.mrf.mxu0 }
  0xf2   : > { %v741_v32 = vpop.f32.mrf.mxu1  ;;  %v740_v43 = vadd.f32 %v2317_v31, %v739_v27 }
  0xf3   : > { %v2319_v35 = vpop.f32.mrf.mxu0 }
  0xf4   : > { %v2320_v37 = vadd.f32 %v2319_v35, %v2318_v28  ;;  %v742_v40 = vpop.f32.mrf.mxu1 }
  0xf5   : > { %v2321_v42 = vpop.f32.mrf.mxu0 }
  0xf6   : > { %v743_v47 = vadd.f32 %v2320_v37, %v742_v40  ;;  %v744_v49 = vpop.f32.mrf.mxu1 }
  0xf7   : > { %v2322_v50 = vpop.f32.mrf.mxu0 }
  0xf8   : > { %v1590_v53 = vpack.c.bf16 %v743_v47, %v740_v43  ;;  %v2323_v55 = vadd.f32 %v2322_v50, %v2321_v42  ;;  %v747_v56 = vpop.f32.mrf.mxu1 }
  0xf9   : > { %v2324_v60 = vpop.f32.mrf.mxu0 }
  0xfa   : > { %v3313_v61 = vadd.f32 %v2323_v55, %v747_v56  ;;  %v749_v62 = vpop.f32.mrf.mxu1  ;;  %2539 = vmatprep.mubr.msk.bf16.mxu0 %vm1606_vm1, %v1590_v53 }
  0xfb   : > { %v2325_v0 = vpop.f32.mrf.mxu0 }
  0xfc   : > { %v2326_v2 = vadd.f32 %v2325_v0, %v2324_v60  ;;  %v750_v3 = vpop.f32.mrf.mxu1 }
  0xfd   : > { %v2327_v4 = vpop.f32.mrf.mxu0 }
  0xfe   : > { %v3316_v5 = vadd.f32 %v2326_v2, %v750_v3  ;;  %v752_v6 = vpop.f32.mrf.mxu1 }
  0xff   : > { %v2328_v7 = vpop.f32.mrf.mxu0 }
 0x100   : > { %v2329_v9 = vadd.f32 %v2328_v7, %v2327_v4  ;;  %v755_v10 = vpop.f32.mrf.mxu1 }
 0x101   : > { %v2330_v11 = vpop.f32.mrf.mxu0 }
 0x102   : > { %v3320_v12 = vadd.f32 %v2329_v9, %v755_v10  ;;  %v757_v13 = vpop.f32.mrf.mxu1 }
 0x103   : > { %v2331_v14 = vpop.f32.mrf.mxu0 }
 0x104   : > { %v2332_v15 = vadd.f32 %v2331_v14, %v2330_v11  ;;  %v758_v16 = vpop.f32.mrf.mxu1 }
 0x105   : > { %v2333_v17 = vpop.f32.mrf.mxu0 }
 0x106   : > { %v3322_v18 = vadd.f32 %v2332_v15, %v758_v16  ;;  %v760_v19 = vpop.f32.mrf.mxu1 }
 0x107   : > { %v2334_v20 = vpop.f32.mrf.mxu0 }
 0x108   : > { %v2335_v23 = vadd.f32 %v2334_v20, %v2333_v17  ;;  %v763_v24 = vpop.f32.mrf.mxu1 }
 0x109   : > { %v2336_v25 = vpop.f32.mrf.mxu0 }
 0x10a   : > { %v3326_v26 = vadd.f32 %v2335_v23, %v763_v24  ;;  %v765_v29 = vpop.f32.mrf.mxu1 }
 0x10b   : > { %v2337_v30 = vpop.f32.mrf.mxu0 }
 0x10c   : > { %v2338_v33 = vadd.f32 %v2337_v30, %v2336_v25  ;;  %v766_v34 = vpop.f32.mrf.mxu1 }
 0x10d   : > { %v2339_v36 = vpop.f32.mrf.mxu0 }
 0x10e   : > { %v3328_v38 = vadd.f32 %v2338_v33, %v766_v34  ;;  %v768_v39 = vpop.f32.mrf.mxu1 }
 0x10f   : > { %v2340_v41 = vpop.f32.mrf.mxu0 }
 0x110   : > { %v2341_v45 = vadd.f32 %v2340_v41, %v2339_v36  ;;  %v771_v46 = vpop.f32.mrf.mxu1 }
 0x111   : > { %v2342_v48 = vpop.f32.mrf.mxu0 }
 0x112   : > { %v3332_v51 = vadd.f32 %v2341_v45, %v771_v46  ;;  %v773_v52 = vpop.f32.mrf.mxu1 }
 0x113   : > { %v2343_v54 = vpop.f32.mrf.mxu0 }
 0x114   : > { %v2344_v57 = vadd.f32 %v2343_v54, %v2342_v48  ;;  %v774_v58 = vpop.f32.mrf.mxu1 }
 0x115   : > { %v2345_v59 = vpop.f32.mrf.mxu0 }
 0x116   : > { %v3334_v63 = vadd.f32 %v2344_v57, %v774_v58  ;;  %v776_v1 = vpop.f32.mrf.mxu1 }
 0x117   : > { %v2346_v22 = vpop.f32.mrf.mxu0 }
 0x118   : > { %v2347_v28 = vadd.f32 %v2346_v22, %v2345_v59  ;;  %v779_v31 = vpop.f32.mrf.mxu1 }
 0x119   : > { %v2348_v32 = vpop.f32.mrf.mxu0 }
 0x11a   : > { %v3338_v35 = vadd.f32 %v2347_v28, %v779_v31  ;;  %v781_v37 = vpop.f32.mrf.mxu1 }
 0x11b   : > { %v2349_v40 = vpop.f32.mrf.mxu0 }
 0x11c   : > { %v2350_v42 = vadd.f32 %v2349_v40, %v2348_v32  ;;  %v782_v43 = vpop.f32.mrf.mxu1 }
 0x11d   : > { %v2351_v47 = vpop.f32.mrf.mxu0 }
 0x11e   : > { %v3340_v49 = vadd.f32 %v2350_v42, %v782_v43  ;;  %v784_v50 = vpop.f32.mrf.mxu1 }
 0x11f   : > { %v2352_v53 = vpop.f32.mrf.mxu0 }
 0x120   : > { %v2353_v56 = vadd.f32 %v2352_v53, %v2351_v47  ;;  %v787_v60 = vpop.f32.mrf.mxu1 }
 0x121   : > { %v2354_v62 = vpop.f32.mrf.mxu0 }
 0x122   : > { %v3344_v0 = vadd.f32 %v2353_v56, %v787_v60  ;;  %v789_v2 = vpop.f32.mrf.mxu1 }
 0x123   : > { %v2355_v3 = vpop.f32.mrf.mxu0 }
 0x124   : > { %v2356_v4 = vadd.f32 %v2355_v3, %v2354_v62  ;;  %v790_v6 = vpop.f32.mrf.mxu1 }
 0x125   : > { %v2357_v7 = vpop.f32.mrf.mxu0 }
 0x126   : > { %v3346_v9 = vadd.f32 %v2356_v4, %v790_v6  ;;  %v792_v10 = vpop.f32.mrf.mxu1 }
 0x127   : > { %v2358_v11 = vpop.f32.mrf.mxu0 }
 0x128   : > { %v2359_v14 = vadd.f32 %v2358_v11, %v2357_v7  ;;  %v795_v15 = vpop.f32.mrf.mxu1 }
 0x129   : > { %v2360_v16 = vpop.f32.mrf.mxu0 }
 0x12a   : > { %v3350_v17 = vadd.f32 %v2359_v14, %v795_v15  ;;  %v797_v19 = vpop.f32.mrf.mxu1 }
 0x12b   : > { %v2361_v20 = vpop.f32.mrf.mxu0 }
 0x12c   : > { %3707 = vst [vmem:[#allocation2_spill] sm:$0xff] %v3350_v17  ;;  %v2362_v23 = vadd.f32 %v2361_v20, %v2360_v16  ;;  %v798_v24 = vpop.f32.mrf.mxu1 }
 0x12d   : > { %v2379_v25 = vpop.f32.mrf.mxu0 }
 0x12e   : > { %v3352_v29 = vadd.f32 %v2362_v23, %v798_v24  ;;  %v800_v30 = vpop.f32.mrf.mxu1 }
 0x12f   : > { %v2380_v33 = vpop.f32.mrf.mxu0 }
 0x130   : > { %v2381_v36 = vadd.f32 %v2380_v33, %v2379_v25  ;;  %v1133_v39 = vpop.f32.mrf.mxu1 }
 0x131   : > { %v2382_v41 = vpop.f32.mrf.mxu0 }
 0x132   : > { %v1134_v45 = vadd.f32 %v2381_v36, %v1133_v39  ;;  %v1135_v46 = vpop.f32.mrf.mxu1 }
 0x133   : > { %v2383_v48 = vpop.f32.mrf.mxu0 }
 0x134   : > { %v2384_v52 = vadd.f32 %v2383_v48, %v2382_v41  ;;  %v1136_v54 = vpop.f32.mrf.mxu1 }
 0x135   : > { %v2385_v57 = vpop.f32.mrf.mxu0 }
 0x136   : > { %v1137_v58 = vadd.f32 %v2384_v52, %v1136_v54  ;;  %v1138_v59 = vpop.f32.mrf.mxu1 }
 0x137   : > { %v2386_v1 = vpop.f32.mrf.mxu0 }
 0x138   : > { %v3356_v22 = vpack.c.bf16 %v1137_v58, %v1134_v45  ;;  %v2387_v28 = vadd.f32 %v2386_v1, %v2385_v57  ;;  %v1141_v31 = vpop.f32.mrf.mxu1 }
 0x139   : > { %v2388_v32 = vpop.f32.mrf.mxu0 }
 0x13a   : > { %v1142_v37 = vadd.f32 %v2387_v28, %v1141_v31  ;;  %v1143_v40 = vpop.f32.mrf.mxu1 }
 0x13b   : > { %v2389_v42 = vpop.f32.mrf.mxu0 }
 0x13c   : > { %v2390_v43 = vadd.f32 %v2389_v42, %v2388_v32  ;;  %v1144_v47 = vpop.f32.mrf.mxu1 }
 0x13d   : > { %v2391_v50 = vpop.f32.mrf.mxu0 }
 0x13e   : > { %v1145_v53 = vadd.f32 %v2390_v43, %v1144_v47  ;;  %v1146_v56 = vpop.f32.mrf.mxu1 }
 0x13f   : > { %v2392_v60 = vpop.f32.mrf.mxu0 }
 0x140   : > { %v3358_v62 = vpack.c.bf16 %v1145_v53, %v1142_v37  ;;  %v2393_v2 = vadd.f32 %v2392_v60, %v2391_v50  ;;  %v1149_v3 = vpop.f32.mrf.mxu1 }
 0x141   : > { %v2394_v4 = vpop.f32.mrf.mxu0 }
 0x142   : > { %v1150_v6 = vadd.f32 %v2393_v2, %v1149_v3  ;;  %v1151_v7 = vpop.f32.mrf.mxu1 }
 0x143   : > { %v2395_v10 = vpop.f32.mrf.mxu0 }
 0x144   : > { %v2396_v11 = vadd.f32 %v2395_v10, %v2394_v4  ;;  %v1152_v14 = vpop.f32.mrf.mxu1 }
 0x145   : > { %v3360_v15 = vpop.f32.mrf.mxu0 }
 0x146   : > { %v1153_v16 = vadd.f32 %v2396_v11, %v1152_v14  ;;  %v1154_v19 = vpop.f32.mrf.mxu1 }
 0x147   : > { %v3362_v20 = vpop.f32.mrf.mxu0 }
 0x148   : > { %v3364_v23 = vpack.c.bf16 %v1153_v16, %v1150_v6  ;;  %v3366_v24 = vpop.f32.mrf.mxu1 }
 0x149   : > { %v3368_v25 = vpop.f32.mrf.mxu0 }
 0x14a   : > { %v1159_v30 = vpop.f32.mrf.mxu1 }
 0x14b   : > { %v3370_v33 = vpop.f32.mrf.mxu0 }
 0x14c   : > { %v3372_v36 = vpop.f32.mrf.mxu1 }
 0x14d   : > { %v3374_v39 = vpop.f32.mrf.mxu0 }
 0x14e   : > { %v1162_v41 = vpop.f32.mrf.mxu1 }
 0x14f   : > { %v3376_v45 = vpop.f32.mrf.mxu0 }
 0x150   : > { %v3378_v46 = vpop.f32.mrf.mxu1 }
 0x151   : > { %v3380_v48 = vpop.f32.mrf.mxu0 }
 0x152   : > { %v1167_v52 = vpop.f32.mrf.mxu1 }
 0x153   : > { %v3382_v54 = vpop.f32.mrf.mxu0 }
 0x154   : > { %v3384_v57 = vpop.f32.mrf.mxu1 }
 0x155   : > { %v2409_v58 = vpop.f32.mrf.mxu0 }
 0x156   : > { %v1170_v59 = vpop.f32.mrf.mxu1 }
 0x157   : > { %v2410_v1 = vpop.f32.mrf.mxu0 }
 0x158   : > { %v1173_v28 = vpop.f32.mrf.mxu1 }
 0x159   : > { %v2412_v31 = vpop.f32.mrf.mxu0 }
 0x15a   : > { %v1175_v32 = vpop.f32.mrf.mxu1 }
 0x15b   : > { %v2413_v37 = vpop.f32.mrf.mxu0 }
 0x15c   : > { %v1176_v40 = vpop.f32.mrf.mxu1  ;;  %v2414_v8 = vadd.f32 %v2413_v37, %v2412_v31 }
 0x15d   : > { %v2415_v42 = vpop.f32.mrf.mxu0 }
 0x15e   : > { %v1178_v43 = vpop.f32.mrf.mxu1 }
 0x15f   : > { %v2416_v47 = vpop.f32.mrf.mxu0 }
 0x160   : > { %v1181_v50 = vpop.f32.mrf.mxu1  ;;  %v2417_v30 = vadd.f32 %v2416_v47, %v2415_v42 }
 0x161   : > { %v2418_v53 = vpop.f32.mrf.mxu0 }
 0x162   : > { %v1183_v56 = vpop.f32.mrf.mxu1  ;;  %v1182_v55 = vadd.f32 %v2417_v30, %v1181_v50 }
 0x163   : > { %v2419_v60 = vpop.f32.mrf.mxu0 }
 0x164   : > { %v1184_v2 = vpop.f32.mrf.mxu1  ;;  %v2420_v11 = vadd.f32 %v2419_v60, %v2418_v53 }
 0x165   : > { %v2421_v3 = vpop.f32.mrf.mxu0 }
 0x166   : > { %v1186_v4 = vpop.f32.mrf.mxu1  ;;  %v1185_v32 = vadd.f32 %v2420_v11, %v1184_v2  ;;  %v2411_v2 = vadd.f32 %v2410_v1, %v2409_v58 }
 0x167   : > { %v2422_v6 = vpop.f32.mrf.mxu0 }
 0x168   : > { %v1189_v7 = vpop.f32.mrf.mxu1  ;;  %v2423_v14 = vadd.f32 %v2422_v6, %v2421_v3  ;;  %v1604_v17 = vpack.c.bf16 %v1185_v32, %v1182_v55  ;;  %v1174_v31 = vadd.f32 %v2411_v2, %v1173_v28 }
 0x169   : > { %v2424_v10 = vpop.f32.mrf.mxu0 }
 0x16a   : > { %v1191_v16 = vpop.f32.mrf.mxu1  ;;  %v1190_v43 = vadd.f32 %v2423_v14, %v1189_v7  ;;  %v1650_v58 = vsel %vm1606_vm1, %v1604_v17, 0 }
 0x16b   : > { %v2425_v19 = vpop.f32.mrf.mxu0 }
 0x16c   : > { %v2426_v41 = vadd.f32 %v2425_v19, %v2424_v10  ;;  %v1192_v52 = vpop.f32.mrf.mxu1 }
 0x16d   : > { %v2443_v59 = vpop.f32.mrf.mxu0 }
 0x16e   : > { %v1193_v34 = vadd.f32 %v2426_v41, %v1192_v52  ;;  %v1194_v13 = vpop.f32.mrf.mxu1 }
 0x16f   : > { %v2444_v56 = vpop.f32.mrf.mxu0 }
 0x170   : > { %v1605_v27 = vpack.c.bf16 %v1193_v34, %v1190_v43  ;;  %v2445_v44 = vadd.f32 %v2444_v56, %v2443_v59  ;;  %v1527_v4 = vpop.f32.mrf.mxu1  ;;  %v1177_v34 = vadd.f32 %v2414_v8, %v1176_v40  ;;  %v2405_v8 = vadd.f32 %v3376_v45, %v3374_v39 }
 0x171   : > { %v2446_v21 = vpop.f32.mrf.mxu0  ;;  %v2402_v39 = vadd.f32 %v3370_v33, %v3368_v25 }
 0x172   : > { %2587 = vmatprep.subr.msk.bf16.mxu0 %vm1606_vm1, %v1605_v27  ;;  %v1653_v53 = vsel %vm1606_vm1, %v1605_v27, 0  ;;  %v1528_v42 = vadd.f32 %v2445_v44, %v1527_v4  ;;  %v1529_v47 = vpop.f32.mrf.mxu1  ;;  %v2408_v44 = vadd.f32 %v3382_v54, %v3380_v48  ;;  %v1603_v14 = vpack.c.bf16 %v1177_v34, %v1174_v31 }
 0x173   : > { %2524 = vmatpush3.bf16.xpose.msra.mxu0 %v1653_v53  ;;  %v2447_v60 = vpop.f32.mrf.mxu0  ;;  %v2399_v4 = vadd.f32 %v3362_v20, %v3360_v15 }
 0x174   : > { %2588 = vmatprep.subr.msk.bf16.mxu0 %vm1606_vm1, %v1604_v17  ;;  %v2448_v13 = vadd.f32 %v2447_v60, %v2446_v21  ;;  %v1530_v3 = vpop.f32.mrf.mxu1  ;;  %v1169_v30 = vadd.f32 %v2408_v44, %v3384_v57  ;;  %v1166_v17 = vadd.f32 %v2405_v8, %v3378_v46  ;;  %v1647_v43 = vsel %vm1606_vm1, %v1603_v14, 0 }
 0x175   : > { %v2449_v50 = vpop.f32.mrf.mxu0  ;;  %v1158_v33 = vadd.f32 %v2399_v4, %v3366_v24 }
 0x176   : > { %v1531_v6 = vadd.f32 %v2448_v13, %v1530_v3  ;;  %v1532_v7 = vpop.f32.mrf.mxu1  ;;  %v1602_v45 = vpack.c.bf16 %v1169_v30, %v1166_v17 }
 0x177   : > { %v2450_v10 = vpop.f32.mrf.mxu0 }
 0x178   : > { %v3389_v55 = vpack.c.bf16 %v1531_v6, %v1528_v42  ;;  %v2451_v37 = vadd.f32 %v2450_v10, %v2449_v50  ;;  %v1535_v11 = vpop.f32.mrf.mxu1  ;;  %v1161_v42 = vadd.f32 %v2402_v39, %v3372_v36  ;;  %v1644_v15 = vsel %vm1606_vm1, %v1602_v45, 0 }
 0x179   : > { %v2452_v27 = vpop.f32.mrf.mxu0  ;;  %v1635_v39 = vsel %vm1606_vm1, %v3358_v62, 0 }
 0x17a   : > { %3708 = vst [vmem:[#allocation3_spill] sm:$0xff] %v3389_v55  ;;  %v1536_v1 = vadd.f32 %v2451_v37, %v1535_v11  ;;  %v1537_v21 = vpop.f32.mrf.mxu1  ;;  %v1601_v13 = vpack.c.bf16 %v1161_v42, %v1158_v33 }
 0x17b   : > { %2526 = vmatpush3.bf16.xpose.msra.mxu0 %v1650_v58  ;;  %v2453_v16 = vpop.f32.mrf.mxu0  ;;  %v1638_v21 = vsel %vm1606_vm1, %v3364_v23, 0 }
 0x17c   : > { %2589 = vmatprep.subr.msk.bf16.mxu0 %vm1606_vm1, %v1603_v14  ;;  %v2454_v28 = vadd.f32 %v2453_v16, %v2452_v27  ;;  %v1538_v40 = vpop.f32.mrf.mxu1  ;;  %v1641_v10 = vsel %vm1606_vm1, %v1601_v13, 0 }
 0x17d   : > { %v3397_v19 = vpop.f32.mrf.mxu0 }
 0x17e   : > { %v1539_v41 = vadd.f32 %v2454_v28, %v1538_v40  ;;  %v1540_v48 = vpop.f32.mrf.mxu1 }
 0x17f   : > { %v3400_v54 = vpop.f32.mrf.mxu0 }
 0x180   : > { %v3403_v52 = vpack.c.bf16 %v1539_v41, %v1536_v1  ;;  %v3405_v59 = vpop.f32.mrf.mxu1 }
 0x181   : > { %v3407_v32 = vpop.f32.mrf.mxu0 }
 0x182   : > { %v1545_v56 = vpop.f32.mrf.mxu1 }
 0x183   : > { %2528 = vmatpush3.bf16.xpose.msra.mxu0 %v1647_v43  ;;  %v3412_v57 = vpop.f32.mrf.mxu0 }
 0x184   : > { %2590 = vmatprep.subr.msk.bf16.mxu0 %vm1606_vm1, %v1602_v45  ;;  %v3417_v46 = vpop.f32.mrf.mxu1 }
 0x185   : > { %v3419_v53 = vpop.f32.mrf.mxu0 }
 0x186   : > { %v1548_v47 = vpop.f32.mrf.mxu1 }
 0x187   : > { %v3422_v25 = vpop.f32.mrf.mxu0 }
 0x188   : > { %v3425_v60 = vpop.f32.mrf.mxu1 }
 0x189   : > { %v3427_v2 = vpop.f32.mrf.mxu0 }
 0x18a   : > { %v1553_v20 = vpop.f32.mrf.mxu1 }
 0x18b   : > { %2530 = vmatpush3.bf16.xpose.msra.mxu0 %v1644_v15  ;;  %v3430_v3 = vpop.f32.mrf.mxu0 }
 0x18c   : > { %2591 = vmatprep.subr.msk.bf16.mxu0 %vm1606_vm1, %v1601_v13  ;;  %v3433_v50 = vpop.f32.mrf.mxu1 }
 0x18d   : > { %v2467_v36 = vpop.f32.mrf.mxu0 }
 0x18e   : > { %v1556_v34 = vpop.f32.mrf.mxu1 }
 0x18f   : > { %v2468_v6 = vpop.f32.mrf.mxu0  ;;  %v1632_v34 = vsel %vm1606_vm1, %v3356_v22, 0 }
 0x190   : > { %v3435_v7 = vpop.f32.mrf.mxu1 }
 0x191   : > { %v2470_v24 = vpop.f32.mrf.mxu0 }
 0x192   : > { %v1561_v31 = vpop.f32.mrf.mxu1 }
 0x193   : > { %2532 = vmatpush3.bf16.xpose.msra.mxu0 %v1641_v10  ;;  %v2471_v37 = vpop.f32.mrf.mxu0 }
 0x194   : > { %2592 = vmatprep.subr.msk.bf16.mxu0 %vm1606_vm1, %v3364_v23  ;;  %v1562_v11 = vpop.f32.mrf.mxu1 }
 0x195   : > { %v2473_v27 = vpop.f32.mrf.mxu0 }
 0x196   : > { %v1564_v44 = vpop.f32.mrf.mxu1 }
 0x197   : > { %v2474_v14 = vpop.f32.mrf.mxu0 }
 0x198   : > { %v1567_v58 = vpop.f32.mrf.mxu1 }
 0x199   : > { %v2476_v1 = vpop.f32.mrf.mxu0 }
 0x19a   : > { %v1569_v16 = vpop.f32.mrf.mxu1 }
 0x19b   : > { %2534 = vmatpush3.bf16.xpose.msra.mxu0 %v1638_v21  ;;  %v2477_v8 = vpop.f32.mrf.mxu0 }
 0x19c   : > { %2593 = vmatprep.subr.msk.bf16.mxu0 %vm1606_vm1, %v3358_v62  ;;  %v1570_v28 = vpop.f32.mrf.mxu1  ;;  %v2475_v62 = vadd.f32 %v2474_v14, %v2473_v27  ;;  %v2478_v31 = vadd.f32 %v2477_v8, %v2476_v1  ;;  %v3710_v27 = vpack.c.bf16 %v3322_v18, %v3320_v12 }
 0x19d   : > { %v2479_v40 = vpop.f32.mrf.mxu0 }
 0x19e   : > { %v1572_v30 = vpop.f32.mrf.mxu1 }
 0x19f   : > { %v2480_v41 = vpop.f32.mrf.mxu0 }
 0x1a0   : > { %v1575_v48 = vpop.f32.mrf.mxu1  ;;  %v2481_v47 = vadd.f32 %v2480_v41, %v2479_v40  ;;  %v2469_v40 = vadd.f32 %v2468_v6, %v2467_v36  ;;  %v2472_v41 = vadd.f32 %v2471_v37, %v2470_v24  ;;  %v2466_v36 = vadd.f32 %v3430_v3, %v3427_v2 }
 0x1a1   : > { %v2482_v17 = vpop.f32.mrf.mxu0  ;;  %v3712_v2 = vpack.c.bf16 %v3334_v63, %v3332_v51  ;;  %v3715_v51 = vld [vmem:[#allocation2_spill] sm:$0xff] }
 0x1a2   : > { %v1577_v45 = vpop.f32.mrf.mxu1  ;;  %v1576_v21 = vadd.f32 %v2481_v47, %v1575_v48  ;;  %v1560_v6 = vadd.f32 %v2469_v40, %v3435_v7  ;;  %v1563_v24 = vadd.f32 %v2472_v41, %v1562_v11  ;;  %v1555_v18 = vadd.f32 %v2466_v36, %v3433_v50 }
 0x1a3   : > { %2536 = vmatpush3.bf16.xpose.msra.mxu0 %v1635_v39  ;;  %v2483_v43 = vpop.f32.mrf.mxu0  ;;  %v3716_v63 = vpack.c.bf16 %v3352_v29, %v3715_v51 }
 0x1a4   : > { %2594 = vmatprep.subr.msk.bf16.mxu0 %vm1606_vm1, %v3356_v22  ;;  %v1578_v23 = vpop.f32.mrf.mxu1  ;;  %v2484_v33 = vadd.f32 %v2483_v43, %v2482_v17  ;;  %v1568_v17 = vadd.f32 %v2475_v62, %v1567_v58  ;;  %v1571_v43 = vadd.f32 %v2478_v31, %v1570_v28  ;;  %v3709_v22 = vpack.c.bf16 %v3316_v5, %v3313_v61 }
 0x1a5   : > { %v2485_v56 = vpop.f32.mrf.mxu0  ;;  %v2457_v61 = vadd.f32 %v3400_v54, %v3397_v19  ;;  %v2460_v5 = vadd.f32 %v3412_v57, %v3407_v32 }
 0x1a6   : > { %v1580_v4 = vpop.f32.mrf.mxu1  ;;  %v1579_v16 = vadd.f32 %v2484_v33, %v1578_v23  ;;  %v1976_v37 = vpack.c.bf16 %v1571_v43, %v1568_v17 }
 0x1a7   : > { %v2486_v42 = vpop.f32.mrf.mxu0  ;;  %v1544_v19 = vadd.f32 %v2457_v61, %v3405_v59  ;;  %v1547_v54 = vadd.f32 %v2460_v5, %v3417_v46 }
 0x1a8   : > { %v2487_v13 = vadd.f32 %v2486_v42, %v2485_v56  ;;  %v1583_v15 = vpop.f32.mrf.mxu1  ;;  %v1977_v56 = vpack.c.bf16 %v1579_v16, %v1576_v21 }
 0x1a9   : > { %v2488_v20 = vpop.f32.mrf.mxu0  ;;  %v1973_v57 = vpack.c.bf16 %v1547_v54, %v1544_v19 }
 0x1aa   : > { %v1585_v10 = vpop.f32.mrf.mxu1  ;;  %v1584_v30 = vadd.f32 %v2487_v13, %v1583_v15 }
 0x1ab   : > { %2538 = vmatpush3.bf16.xpose.msra.mxu0 %v1632_v34  ;;  %v2489_v44 = vpop.f32.mrf.mxu0 }
 0x1ac   : > { %v2490_v39 = vadd.f32 %v2489_v44, %v2488_v20  ;;  %v1586_v45 = vpop.f32.mrf.mxu1 }
 0x1ae   : > { %v1587_v4 = vadd.f32 %v2490_v39, %v1586_v45  ;;  %v1588_v55 = vpop.f32.mrf.mxu1 }
 0x1af   : > { %v2463_v55 = vadd.f32 %v3422_v25, %v3419_v53  ;;  %v1975_v53 = vpack.c.bf16 %v1563_v24, %v1560_v6  ;;  %v3711_v25 = vpack.c.bf16 %v3328_v38, %v3326_v26  ;;  %v3713_v26 = vpack.c.bf16 %v3340_v49, %v3338_v35  ;;  %v3717_v35 = vld [vmem:[#allocation3_spill] sm:$0xff] }
 0x1b0   : > { %v1978_v42 = vpack.c.bf16 %v1587_v4, %v1584_v30  ;;  %v3714_v38 = vpack.c.bf16 %v3346_v9, %v3344_v0  ;;  %v1768_v49 = vlaneseq }
 0x1b1   : > { %v1552_v12 = vadd.f32 %v2463_v55, %v3425_v60 }
 0x1b2   : > { %2540 = vmatmul.mubr.msk.bf16.vlgmr.msra.gmra.mxu0 %vm1606_vm1, %v3709_v22  ;;  %2555 = vmatprep.subr.bf16.mxu1 %v1978_v42  ;;  %v3495_v0 = vshrl.u32 %v1768_v49, 7  ;;  %v3498_v59 = vand.u32 127, %v1768_v49 }
 0x1b3   : > { %2543 = vmatprep.mubr.msk.bf16.mxu0 %vm1606_vm1, %v3710_v27  ;;  %2556 = vmatpush3.bf16.msra.mxu1 %v1978_v42  ;;  %v1974_v32 = vpack.c.bf16 %v1555_v18, %v1552_v12 }
 0x1b4   : > { %2557 = vmatprep.subr.bf16.mxu1 %v1977_v56  ;;  %v1771_v9 = vadd.s32 16, %v3495_v0  ;;  %v1772_v29 = vadd.s32 24, %v3495_v0  ;;  %vm1787_vm3 = vcmp.le.s32.totalorder %v3498_v59, %v3495_v0  ;;  %v1773_v8 = vadd.s32 32, %v3495_v0 }
 0x1b5   : > { %v1775_v13 = vadd.s32 48, %v3495_v0  ;;  %v1774_v15 = vadd.s32 40, %v3495_v0  ;;  %v1776_v44 = vadd.s32 56, %v3495_v0  ;;  %v1777_v21 = vadd.s32 64, %v3495_v0 }
 0x1b6   : > { %vm1789_vm2 = vcmp.le.s32.totalorder %v3498_v59, %v1771_v9  ;;  %vm1790_vm4 = vcmp.le.s32.totalorder %v3498_v59, %v1772_v29  ;;  %vm1791_vm6 = vcmp.le.s32.totalorder %v3498_v59, %v1773_v8  ;;  %v1779_v41 = vadd.s32 80, %v3495_v0 }
 0x1b7   : > { %2558 = vmatpush3.bf16.msra.mxu1 %v1977_v56  ;;  %vm1793_vm7 = vcmp.le.s32.totalorder %v3498_v59, %v1775_v13  ;;  %vm1792_vm8 = vcmp.le.s32.totalorder %v3498_v59, %v1774_v15  ;;  %vm1794_vm9 = vcmp.le.s32.totalorder %v3498_v59, %v1776_v44  ;;  %vm1795_vm10 = vcmp.le.s32.totalorder %v3498_v59, %v1777_v21 }
 0x1b8   : > { %2559 = vmatprep.subr.bf16.mxu1 %v1976_v37  ;;  %v1778_v17 = vadd.s32 72, %v3495_v0  ;;  %vm1797_vm11 = vcmp.le.s32.totalorder %v3498_v59, %v1779_v41  ;;  %v1780_v36 = vadd.s32 88, %v3495_v0  ;;  %v1781_v6 = vadd.s32 96, %v3495_v0 }
 0x1ba   : > { %2544 = vmatmul.mubr.msk.bf16.gmra.mxu0 %vm1606_vm1, %v3711_v25  ;;  %vm1796_vm12 = vcmp.le.s32.totalorder %v3498_v59, %v1778_v17  ;;  %vm1798_vm13 = vcmp.le.s32.totalorder %v3498_v59, %v1780_v36  ;;  %vm1799_vm14 = vcmp.le.s32.totalorder %v3498_v59, %v1781_v6  ;;  %v1782_v25 = vadd.s32 104, %v3495_v0 }
 0x1bb   : > { %2547 = vmatprep.mubr.msk.bf16.mxu0 %vm1606_vm1, %v3712_v2  ;;  %2560 = vmatpush3.bf16.msra.mxu1 %v1976_v37 }
 0x1bc   : > { %2561 = vmatprep.subr.bf16.mxu1 %v1975_v53  ;;  %vm1800_vm0 = vcmp.le.s32.totalorder %v3498_v59, %v1782_v25 }
 0x1bf   : > { %2562 = vmatpush3.bf16.msra.mxu1 %v1975_v53  ;;  %v1783_v53 = vadd.s32 112, %v3495_v0 }
 0x1c0   : > { %2563 = vmatprep.subr.bf16.mxu1 %v1974_v32 }
 0x1c1   : > { %vm1801_vm15 = vcmp.le.s32.totalorder %v3498_v59, %v1783_v53 }
 0x1c2   : > { %2548 = vmatmul.mubr.msk.bf16.gmra.mxu0 %vm1606_vm1, %v3713_v26 }
 0x1c3   : > { %2551 = vmatprep.mubr.msk.bf16.mxu0 %vm1606_vm1, %v3714_v38  ;;  %2564 = vmatpush3.bf16.msra.mxu1 %v1974_v32  ;;  %v1784_v38 = vadd.s32 120, %v3495_v0 }
 0x1c4   : > { %2565 = vmatprep.subr.bf16.mxu1 %v1973_v57 }
 0x1c7   : > { %2566 = vmatpush3.bf16.msra.mxu1 %v1973_v57 }
 0x1c8   : > { %2567 = vmatprep.subr.bf16.mxu1 %v3403_v52 }
 0x1ca   : > { %2552 = vmatmul.mubr.msk.bf16.gmra.mxu0 %vm1606_vm1, %v3716_v63 }
 0x1cb   : > { %2568 = vmatpush3.bf16.msra.mxu1 %v3403_v52  ;;  %v1770_v52 = vadd.s32 8, %v3495_v0 }
 0x1cc   : > { %2569 = vmatprep.subr.bf16.mxu1 %v3717_v35 }
 0x1cd   : > { %vm1788_vm5 = vcmp.le.s32.totalorder %v3498_v59, %v1770_v52 }
 0x1cf   : > { %2570 = vmatpush3.bf16.msra.mxu1 %v3717_v35 }
 0x272   : > { %v2541_v46 = vpop.f32.mrf.mxu0 }
 0x273   : > { %v1754_v60 = vmul.f32 0.125, %v2541_v46 }
 0x274   : > { %v1689_v3 = vpop.f32.mrf.mxu0 }
 0x275   : > { %v1752_v50 = vmul.f32 0.125, %v1689_v3  ;;  %v3505_v7 = vsel %vm1789_vm2, %v1754_v60, -inf  ;;  %vm1802_vm2 = vcmp.le.s32.totalorder %v3498_v59, %v1784_v38 }
 0x276   : > { %1823 = vmax.xlane.f32.xlu1 %v3505_v7  ;;  %v2542_v11 = vpop.f32.mrf.mxu0 }
 0x277   : > { %v1755_v14 = vmul.f32 0.125, %v2542_v11  ;;  %v3509_v58 = vsel %vm1787_vm3, %v1752_v50, -inf }
 0x278   : > { %1819 = vmax.xlane.f32.xlu0 %v3509_v58  ;;  %v1692_v1 = vpop.f32.mrf.mxu0 }
 0x279   : > { %v1753_v28 = vmul.f32 0.125, %v1692_v1  ;;  %v3514_v48 = vsel %vm1790_vm4, %v1755_v14, -inf }
 0x27a   : > { %1825 = vmax.xlane.f32.xlu1 %v3514_v48  ;;  %v2545_v23 = vpop.f32.mrf.mxu0 }
 0x27b   : > { %v3517_v47 = vsel %vm1788_vm5, %v1753_v28, -inf  ;;  %v1758_v10 = vmul.f32 0.125, %v2545_v23 }
 0x27c   : > { %1821 = vmax.xlane.f32.xlu0 %v3517_v47  ;;  %v1705_v33 = vpop.f32.mrf.mxu0 }
 0x27d   : > { %v1756_v20 = vmul.f32 0.125, %v1705_v33  ;;  %v3530_v45 = vsel %vm1793_vm7, %v1758_v10, -inf }
 0x27e   : > { %v2546_v34 = vpop.f32.mrf.mxu0 }
 0x27f   : > { %v3523_v62 = vsel %vm1791_vm6, %v1756_v20, -inf  ;;  %v1759_v39 = vmul.f32 0.125, %v2546_v34 }
 0x280   : > { %1827 = vmax.xlane.f32.xlu0 %v3523_v62  ;;  %v1708_v31 = vpop.f32.mrf.mxu0 }
 0x281   : > { %v1757_v16 = vmul.f32 0.125, %v1708_v31  ;;  %v3540_v22 = vsel %vm1794_vm9, %v1759_v39, -inf }
 0x282   : > { %v2549_v30 = vpop.f32.mrf.mxu0 }
 0x283   : > { %v3532_v4 = vsel %vm1792_vm8, %v1757_v16, -inf  ;;  %v1762_v42 = vmul.f32 0.125, %v2549_v30 }
 0x284   : > { %1831 = vmax.xlane.f32.xlu0 %v3530_v45  ;;  %1829 = vmax.xlane.f32.xlu1 %v3532_v4  ;;  %v1721_v40 = vpop.f32.mrf.mxu0 }
 0x285   : > { %v1760_v43 = vmul.f32 0.125, %v1721_v40  ;;  %v3550_v5 = vsel %vm1797_vm11, %v1762_v42, -inf }
 0x286   : > { %v2550_v56 = vpop.f32.mrf.mxu0 }
 0x287   : > { %v3542_v27 = vsel %vm1795_vm10, %v1760_v43, -inf  ;;  %v1763_v61 = vmul.f32 0.125, %v2550_v56 }
 0x288   : > { %1833 = vmax.xlane.f32.xlu1 %v3540_v22  ;;  %1835 = vmax.xlane.f32.xlu0 %v3542_v27  ;;  %v1724_v55 = vpop.f32.mrf.mxu0 }
 0x289   : > { %v1761_v24 = vmul.f32 0.125, %v1724_v55  ;;  %v3560_v32 = vsel %vm1798_vm13, %v1763_v61, -inf }
 0x28a   : > { %v2553_v37 = vpop.f32.mrf.mxu0 }
 0x28b   : > { %v3552_v12 = vsel %vm1796_vm12, %v1761_v24, -inf  ;;  %v1766_v54 = vmul.f32 0.125, %v2553_v37 }
 0x28c   : > { %1839 = vmax.xlane.f32.xlu0 %v3550_v5  ;;  %1837 = vmax.xlane.f32.xlu1 %v3552_v12  ;;  %v1737_v18 = vpop.f32.mrf.mxu0 }
 0x28d   : > { %v1764_v2 = vmul.f32 0.125, %v1737_v18  ;;  %v3569_v35 = vsel %vm1801_vm15, %v1766_v54, -inf }
 0x28e   : > { %v2554_v19 = vpop.f32.mrf.mxu0 }
 0x28f   : > { %v3562_v57 = vsel %vm1799_vm14, %v1764_v2, -inf  ;;  %v1767_v63 = vmul.f32 0.125, %v2554_v19 }
 0x290   : > { %1841 = vmax.xlane.f32.xlu1 %v3560_v32  ;;  %1843 = vmax.xlane.f32.xlu0 %v3562_v57  ;;  %v1740_v26 = vpop.f32.mrf.mxu0 }
 0x291   : > { %v1765_v51 = vmul.f32 0.125, %v1740_v26  ;;  %v3576_v9 = vsel %vm1802_vm2, %v1767_v63, -inf }
 0x293   : > { %v3571_v49 = vsel %vm1800_vm0, %v1765_v51, -inf }
 0x294   : > { %1847 = vmax.xlane.f32.xlu0 %v3569_v35  ;;  %1845 = vmax.xlane.f32.xlu1 %v3571_v49 }
 0x298   : > { %1849 = vmax.xlane.f32.xlu1 %v3576_v9 }
 0x2ff   : > { %v1824_v46 = vpop.xlane.xlu1 %1823 }
 0x300   : > { %v1853_v29 = vsub.f32 %v3505_v7, %v1824_v46 }
 0x301   : > { %v1820_v0 = vpop.xlane.xlu0 %1819 }
 0x302   : > { %v1851_v60 = vsub.f32 %v3509_v58, %v1820_v0  ;;  %v1871_v50 = vmul.f32 1.442695, %v1853_v29 }
 0x303   : > { %v1826_v3 = vpop.xlane.xlu1 %1825 }
 0x304   : > { %v1867_v52 = vmul.f32 1.442695, %v1851_v60  ;;  %v1854_v11 = vsub.f32 %v3514_v48, %v1826_v3 }
 0x305   : > { %v1822_v14 = vpop.xlane.xlu0 %1821 }
 0x306   : > { %2727 = vpow2.f32 %v1867_v52  ;;  %v1852_v1 = vsub.f32 %v3517_v47, %v1822_v14  ;;  %v1873_v8 = vmul.f32 1.442695, %v1854_v11 }
 0x307   : > { %2729 = vpow2.f32 %v1871_v50 }
 0x308   : > { %v1869_v59 = vmul.f32 1.442695, %v1852_v1 }
 0x309   : > { %v1828_v28 = vpop.xlane.xlu0 %1827 }
 0x30a   : > { %2731 = vpow2.f32 %v1869_v59  ;;  %v1855_v23 = vsub.f32 %v3523_v62, %v1828_v28 }
 0x30b   : > { %2733 = vpow2.f32 %v1873_v8 }
 0x30c   : > { %v1875_v7 = vmul.f32 1.442695, %v1855_v23 }
 0x30d   : > { %v1832_v33 = vpop.xlane.xlu0 %1831  ;;  %v1830_v58 = vpop.xlane.xlu1 %1829 }
 0x30e   : > { %2735 = vpow2.f32 %v1875_v7  ;;  %v1857_v13 = vsub.f32 %v3530_v45, %v1832_v33  ;;  %v1856_v48 = vsub.f32 %v3532_v4, %v1830_v58 }
 0x310   : > { %v1879_v15 = vmul.f32 1.442695, %v1857_v13  ;;  %v1877_v20 = vmul.f32 1.442695, %v1856_v48 }
 0x311   : > { %v1834_v34 = vpop.xlane.xlu1 %1833  ;;  %v1836_v47 = vpop.xlane.xlu0 %1835 }
 0x312   : > { %2737 = vpow2.f32 %v1879_v15  ;;  %v1858_v10 = vsub.f32 %v3540_v22, %v1834_v34  ;;  %v1859_v31 = vsub.f32 %v3542_v27, %v1836_v47 }
 0x313   : > { %v3588_v44 = vpop.eup %2727  ;;  %2739 = vpow2.f32 %v1877_v20 }
 0x314   : > { %v1881_v62 = vmul.f32 1.442695, %v1858_v10  ;;  %v1883_v21 = vmul.f32 1.442695, %v1859_v31  ;;  %1899 = vadd.xlane.f32.xlu0 %v3588_v44  ;;  %v3591_v39 = vpop.eup %2729 }
 0x315   : > { %v1840_v16 = vpop.xlane.xlu0 %1839  ;;  %v1838_v30 = vpop.xlane.xlu1 %1837 }
 0x316   : > { %2741 = vpow2.f32 %v1881_v62  ;;  %v1861_v45 = vsub.f32 %v3550_v5, %v1840_v16  ;;  %v1860_v4 = vsub.f32 %v3552_v12, %v1838_v30 }
 0x317   : > { %v3595_v40 = vpop.eup %2731  ;;  %2743 = vpow2.f32 %v1883_v21 }
 0x318   : > { %v1887_v41 = vmul.f32 1.442695, %v1861_v45  ;;  %v1885_v17 = vmul.f32 1.442695, %v1860_v4  ;;  %1903 = vadd.xlane.f32.xlu0 %v3591_v39  ;;  %1901 = vadd.xlane.f32.xlu1 %v3595_v40  ;;  %v3599_v42 = vpop.eup %2733 }
 0x319   : > { %v1842_v43 = vpop.xlane.xlu1 %1841  ;;  %v1844_v56 = vpop.xlane.xlu0 %1843 }
 0x31a   : > { %2745 = vpow2.f32 %v1887_v41  ;;  %v1862_v22 = vsub.f32 %v3560_v32, %v1842_v43  ;;  %v1863_v27 = vsub.f32 %v3562_v57, %v1844_v56 }
 0x31b   : > { %v3603_v55 = vpop.eup %2735  ;;  %2747 = vpow2.f32 %v1885_v17 }
 0x31c   : > { %v1889_v36 = vmul.f32 1.442695, %v1862_v22  ;;  %v1891_v6 = vmul.f32 1.442695, %v1863_v27  ;;  %1907 = vadd.xlane.f32.xlu0 %v3603_v55  ;;  %1905 = vadd.xlane.f32.xlu1 %v3599_v42 }
 0x31d   : > { %v1848_v24 = vpop.xlane.xlu0 %1847  ;;  %v1846_v37 = vpop.xlane.xlu1 %1845 }
 0x31e   : > { %2749 = vpow2.f32 %v1889_v36  ;;  %v1865_v61 = vsub.f32 %v3569_v35, %v1848_v24  ;;  %v1864_v5 = vsub.f32 %v3571_v49, %v1846_v37 }
 0x31f   : > { %v3609_v12 = vpop.eup %2737  ;;  %2751 = vpow2.f32 %v1891_v6 }
 0x320   : > { %v3611_v18 = vpop.eup %2739  ;;  %v1895_v53 = vmul.f32 1.442695, %v1865_v61  ;;  %v1893_v25 = vmul.f32 1.442695, %v1864_v5  ;;  %1911 = vadd.xlane.f32.xlu0 %v3609_v12 }
 0x321   : > { %1909 = vadd.xlane.f32.xlu1 %v3611_v18  ;;  %v1850_v2 = vpop.xlane.xlu1 %1849 }
 0x322   : > { %2753 = vpow2.f32 %v1895_v53  ;;  %v1866_v19 = vsub.f32 %v3576_v9, %v1850_v2 }
 0x323   : > { %v3616_v54 = vpop.eup %2741  ;;  %2755 = vpow2.f32 %v1893_v25 }
 0x324   : > { %v3618_v32 = vpop.eup %2743  ;;  %v1897_v57 = vmul.f32 1.442695, %v1866_v19 }
 0x325   : > { %1915 = vadd.xlane.f32.xlu0 %v3618_v32  ;;  %1913 = vadd.xlane.f32.xlu1 %v3616_v54 }
 0x326   : > { %2757 = vpow2.f32 %v1897_v57 }
 0x327   : > { %v3622_v26 = vpop.eup %2745 }
 0x328   : > { %v3624_v38 = vpop.eup %2747 }
 0x329   : > { %1919 = vadd.xlane.f32.xlu0 %v3622_v26  ;;  %1917 = vadd.xlane.f32.xlu1 %v3624_v38 }
 0x32b   : > { %v3628_v51 = vpop.eup %2749 }
 0x32c   : > { %v3630_v63 = vpop.eup %2751 }
 0x32d   : > { %1923 = vadd.xlane.f32.xlu0 %v3630_v63  ;;  %1921 = vadd.xlane.f32.xlu1 %v3628_v51 }
 0x32f   : > { %v3634_v35 = vpop.eup %2753 }
 0x330   : > { %v3636_v49 = vpop.eup %2755 }
 0x331   : > { %1927 = vadd.xlane.f32.xlu0 %v3634_v35  ;;  %1925 = vadd.xlane.f32.xlu1 %v3636_v49 }
 0x333   : > { %v3640_v9 = vpop.eup %2757 }
 0x335   : > { %1929 = vadd.xlane.f32.xlu1 %v3640_v9 }
 0x39d   : > { %v1900_v46 = vpop.xlane.xlu0 %1899 }
 0x39e   : > { %2759 = vrcp.f32 %v1900_v46 }
 0x3a1   : > { %v1904_v29 = vpop.xlane.xlu0 %1903  ;;  %v1902_v0 = vpop.xlane.xlu1 %1901 }
 0x3a2   : > { %2761 = vrcp.f32 %v1902_v0 }
 0x3a3   : > { %2763 = vrcp.f32 %v1904_v29 }
 0x3a5   : > { %v1908_v60 = vpop.xlane.xlu0 %1907  ;;  %v1906_v3 = vpop.xlane.xlu1 %1905 }
 0x3a6   : > { %2765 = vrcp.f32 %v1906_v3 }
 0x3a7   : > { %2767 = vrcp.f32 %v1908_v60 }
 0x3a9   : > { %v1912_v52 = vpop.xlane.xlu0 %1911 }
 0x3aa   : > { %v1910_v50 = vpop.xlane.xlu1 %1909 }
 0x3ab   : > { %2769 = vrcp.f32 %v1910_v50  ;;  %v2760_v11 = vpop.eup %2759 }
 0x3ac   : > { %2771 = vrcp.f32 %v1912_v52  ;;  %v1947_v8 = vmul.f32 %v2760_v11, %v3588_v44 }
 0x3ae   : > { %v1916_v14 = vpop.xlane.xlu0 %1915  ;;  %v1914_v1 = vpop.xlane.xlu1 %1913 }
 0x3af   : > { %v2762_v59 = vpop.eup %2761  ;;  %2773 = vrcp.f32 %v1914_v1 }
 0x3b0   : > { %v1948_v28 = vmul.f32 %v2762_v59, %v3595_v40  ;;  %v2764_v23 = vpop.eup %2763  ;;  %2775 = vrcp.f32 %v1916_v14 }
 0x3b1   : > { %v1949_v48 = vmul.f32 %v2764_v23, %v3591_v39 }
 0x3b2   : > { %v1920_v7 = vpop.xlane.xlu0 %1919  ;;  %v1918_v33 = vpop.xlane.xlu1 %1917  ;;  %v1963_v58 = vpack.c.bf16 %v1948_v28, %v1947_v8 }
 0x3b3   : > { %v2766_v13 = vpop.eup %2765  ;;  %2777 = vrcp.f32 %v1918_v33 }
 0x3b4   : > { %2571 = vmatprep.mubr.bf16.mxu1 %v1963_v58  ;;  %v1950_v15 = vmul.f32 %v2766_v13, %v3599_v42  ;;  %v2768_v20 = vpop.eup %2767  ;;  %2779 = vrcp.f32 %v1920_v7 }
 0x3b5   : > { %v1951_v44 = vmul.f32 %v2768_v20, %v3603_v55 }
 0x3b6   : > { %v1924_v34 = vpop.xlane.xlu0 %1923  ;;  %v1922_v47 = vpop.xlane.xlu1 %1921  ;;  %v1964_v10 = vpack.c.bf16 %v1950_v15, %v1949_v48 }
 0x3b7   : > { %2781 = vrcp.f32 %v1922_v47 }
 0x3b8   : > { %v2770_v31 = vpop.eup %2769  ;;  %2572 = vmatmul.mubr.bf16.vlgmr.msra.gmra.mxu1 %v1964_v10  ;;  %2783 = vrcp.f32 %v1924_v34 }
 0x3b9   : > { %v1952_v62 = vmul.f32 %v2770_v31, %v3611_v18  ;;  %v2772_v30 = vpop.eup %2771 }
 0x3ba   : > { %v1928_v21 = vpop.xlane.xlu0 %1927  ;;  %v1926_v16 = vpop.xlane.xlu1 %1925  ;;  %v1953_v40 = vmul.f32 %v2772_v30, %v3609_v12 }
 0x3bb   : > { %v1965_v45 = vpack.c.bf16 %v1952_v62, %v1951_v44  ;;  %2785 = vrcp.f32 %v1926_v16 }
 0x3bc   : > { %v2774_v39 = vpop.eup %2773  ;;  %2787 = vrcp.f32 %v1928_v21 }
 0x3bd   : > { %2575 = vmatprep.mubr.bf16.mxu1 %v1965_v45  ;;  %v1954_v41 = vmul.f32 %v2774_v39, %v3616_v54  ;;  %v2776_v17 = vpop.eup %2775 }
 0x3be   : > { %v1930_v4 = vpop.xlane.xlu1 %1929  ;;  %v1955_v42 = vmul.f32 %v2776_v17, %v3618_v32 }
 0x3bf   : > { %2789 = vrcp.f32 %v1930_v4  ;;  %v1966_v43 = vpack.c.bf16 %v1954_v41, %v1953_v40 }
 0x3c0   : > { %v2778_v56 = vpop.eup %2777 }
 0x3c1   : > { %2576 = vmatmul.mubr.bf16.gmra.mxu1 %v1966_v43  ;;  %v1956_v22 = vmul.f32 %v2778_v56, %v3624_v38  ;;  %v2780_v27 = vpop.eup %2779 }
 0x3c2   : > { %v1957_v6 = vmul.f32 %v2780_v27, %v3622_v26 }
 0x3c3   : > { %v1967_v55 = vpack.c.bf16 %v1956_v22, %v1955_v42 }
 0x3c4   : > { %v2782_v36 = vpop.eup %2781 }
 0x3c5   : > { %2579 = vmatprep.mubr.bf16.mxu1 %v1967_v55  ;;  %v1958_v24 = vmul.f32 %v2782_v36, %v3628_v51  ;;  %v2784_v37 = vpop.eup %2783 }
 0x3c6   : > { %v1959_v18 = vmul.f32 %v2784_v37, %v3630_v63 }
 0x3c7   : > { %v1968_v61 = vpack.c.bf16 %v1958_v24, %v1957_v6 }
 0x3c8   : > { %v2786_v5 = vpop.eup %2785 }
 0x3c9   : > { %v2788_v12 = vpop.eup %2787  ;;  %2580 = vmatmul.mubr.bf16.gmra.mxu1 %v1968_v61  ;;  %v1960_v53 = vmul.f32 %v2786_v5, %v3636_v49 }
 0x3ca   : > { %v1961_v19 = vmul.f32 %v2788_v12, %v3634_v35 }
 0x3cb   : > { %v1969_v2 = vpack.c.bf16 %v1960_v53, %v1959_v18 }
 0x3cc   : > { %v2790_v25 = vpop.eup %2789 }
 0x3cd   : > { %v1962_v54 = vmul.f32 %v2790_v25, %v3640_v9  ;;  %2583 = vmatprep.mubr.bf16.mxu1 %v1969_v2 }
 0x3cf   : > { %v1970_v32 = vpack.c.bf16 %v1962_v54, %v1961_v19 }
 0x3d1   : > { %2584 = vmatmul.mubr.bf16.gmra.mxu1 %v1970_v32 }
 0x478   : > { %v2573_v57 = vpop.f32.mrf.mxu1 }
 0x479   : > { %2078 = vst.msk [vmem:[%s3663_s6 + $0x10] sm:$0xff] %vm1606_vm1, %v2573_v57 }
 0x47a   : > { %v2013_v26 = vpop.f32.mrf.mxu1 }
 0x47b   : > { %2076 = vst.msk [vmem:[%s3663_s6] sm:$0xff] %vm1606_vm1, %v2013_v26 }
 0x47c   : > { %v2574_v38 = vpop.f32.mrf.mxu1 }
 0x47d   : > { %2079 = vst.msk [vmem:[%s3663_s6 + $0x18] sm:$0xff] %vm1606_vm1, %v2574_v38 }
 0x47e   : > { %v2016_v51 = vpop.f32.mrf.mxu1 }
 0x47f   : > { %2077 = vst.msk [vmem:[%s3663_s6 + $0x8] sm:$0xff] %vm1606_vm1, %v2016_v51 }
 0x481   : > { %v2577_v63 = vpop.f32.mrf.mxu1 }
 0x482   : > { %2082 = vst.msk [vmem:[%s3663_s6 + $0x30] sm:$0xff] %vm1606_vm1, %v2577_v63 }
 0x483   : > { %v2029_v35 = vpop.f32.mrf.mxu1 }
 0x484   : > { %2080 = vst.msk [vmem:[%s3663_s6 + $0x20] sm:$0xff] %vm1606_vm1, %v2029_v35 }
 0x485   : > { %v2578_v49 = vpop.f32.mrf.mxu1 }
 0x486   : > { %2083 = vst.msk [vmem:[%s3663_s6 + $0x38] sm:$0xff] %vm1606_vm1, %v2578_v49 }
 0x487   : > { %v2032_v9 = vpop.f32.mrf.mxu1 }
 0x488   : > { %2081 = vst.msk [vmem:[%s3663_s6 + $0x28] sm:$0xff] %vm1606_vm1, %v2032_v9 }
 0x489   : > { %v2581_v46 = vpop.f32.mrf.mxu1 }
 0x48a   : > { %2086 = vst.msk [vmem:[%s3663_s6 + $0x50] sm:$0xff] %vm1606_vm1, %v2581_v46 }
 0x48b   : > { %v2045_v29 = vpop.f32.mrf.mxu1 }
 0x48c   : > { %2084 = vst.msk [vmem:[%s3663_s6 + $0x40] sm:$0xff] %vm1606_vm1, %v2045_v29 }
 0x48d   : > { %v2582_v0 = vpop.f32.mrf.mxu1 }
 0x48e   : > { %2087 = vst.msk [vmem:[%s3663_s6 + $0x58] sm:$0xff] %vm1606_vm1, %v2582_v0 }
 0x48f   : > { %v2048_v60 = vpop.f32.mrf.mxu1 }
 0x490   : > { %2085 = vst.msk [vmem:[%s3663_s6 + $0x48] sm:$0xff] %vm1606_vm1, %v2048_v60 }
 0x491   : > { %v2585_v3 = vpop.f32.mrf.mxu1 }
 0x492   : > { %2090 = vst.msk [vmem:[%s3663_s6 + $0x70] sm:$0xff] %vm1606_vm1, %v2585_v3 }
 0x493   : > { %v2061_v52 = vpop.f32.mrf.mxu1 }
 0x494   : > { %2088 = vst.msk [vmem:[%s3663_s6 + $0x60] sm:$0xff] %vm1606_vm1, %v2061_v52 }
 0x495   : > { %v2586_v50 = vpop.f32.mrf.mxu1 }
 0x496   : > { %2091 = vst.msk [vmem:[%s3663_s6 + $0x78] sm:$0xff] %vm1606_vm1, %v2586_v50 }
 0x497   : > { %v2064_v11 = vpop.f32.mrf.mxu1 }
 0x498   : > { %2089 = vst.msk [vmem:[%s3663_s6 + $0x68] sm:$0xff] %vm1606_vm1, %v2064_v11 }
 0x499 PF: > { %s14_s15 = sadd.s32 1, %s2797_s15  }
 0x49a   : > { %p11_p4 = scmp.ge.s32.totalorder %s14_s15, 4  }
 0x49c   :  { %13 = sbr.rel (!%p11_p4) target bundleno = 1 (0x1), region = 66 }

</bundles_post_ra>
